<compile_context>
chip_gen: v5e
topology: v5e:2x2
jax: 0.10.0
libtpu: 0.0.40
codegen_flags: <defaults>
</compile_context>

<pallas_src>
import numpy as np
import jax
import jax.numpy as jnp
from jax.experimental import pallas as pl
from jax.experimental.pallas import tpu as pltpu

# ---------------------------------------------------------------------------
# Problem size (small demo shapes; the structure scales by raising N/H/W and
# TILE_P).  Residual-compatible configuration: inplanes == planes * expansion.
N, H, W = 4, 16, 16
HW = H * W                       # 256 positions per image
P = N * HW                       # 1024 flattened positions (lane axis)
TILE_P = 256                     # lane tile: multiple of 128 AND of H*W so the
                                 # rolled 3x3 taps never need another tile's
                                 # data.  Real workloads: 512-2048.
NUM_TILES = P // TILE_P          # 4
NUM_PHASES = 4                   # 3 stats sweeps + 1 output sweep

PLANES = 4
EXPANSION = 4
INPLANES = PLANES * EXPANSION    # 16 (so `out += identity` is valid)
WIDTH = PLANES                   # groups=1, base_width=64 -> width = planes
WPAD = 8                         # width padded to a full sublane tile
COUT = PLANES * EXPANSION        # 16
K2 = 9 * WPAD                    # 72 = contraction dim of the fused 3x3 matmul
EPS = 1e-5

assert TILE_P % 128 == 0 and TILE_P % HW == 0 and P % TILE_P == 0
assert INPLANES == COUT          # residual add requires matching channels


def _round_bf16(a):
    """Round to bf16-representable f32 (keeps MXU bf16 passes exact)."""
    return a.astype(jnp.bfloat16).astype(jnp.float32)


def _make_tap_mask():
    """Compile-time 0/1 masks implementing the conv3x3 zero padding.

    Row block t = kh*3+kw of the (9*WPAD, TILE_P) mask is 1 where the source
    pixel (h+kh-1, w+kw-1) lies inside the image, 0 otherwise.  Depends only on
    the static H, W and the (whole-image) tile layout, so it is precomputed
    here instead of being rebuilt from iota/compares inside the kernel.
    """
    lane = np.arange(TILE_P)
    hh = (lane // W) % H
    ww = lane % W
    blocks = []
    for kh in range(3):
        for kw in range(3):
            dh, dw = kh - 1, kw - 1
            valid = ((hh >= -dh) & (hh < H - dh) &
                     (ww >= -dw) & (ww < W - dw)).astype(np.float32)
            blocks.append(np.repeat(valid[None, :], WPAD, axis=0))
    return np.concatenate(blocks, axis=0)                      # (72, TILE_P)


# ---------------------------------------------------------------------------
# Kernel
# ---------------------------------------------------------------------------
def bottleneck_kernel(x_ref, w1_ref, w2_ref, w3_ref, bn12_ref, bn3_ref,
                      mask_ref, o_ref,
                      stat8_ref, stat16_ref, aff12_ref, aff3_ref):
    phase = pl.program_id(0)
    t = pl.program_id(1)
    last_t = pl.num_programs(1) - 1
    inv_p = 1.0 / float(P)

    x = x_ref[...]                                  # (INPLANES, TILE_P), f32
    x_bf = x.astype(jnp.bfloat16)                   # exact: x is bf16-valued
    bn12 = bn12_ref[...]                            # (WPAD, 4) [g1 b1 g2 b2]
    bn3 = bn3_ref[...]                              # (COUT, 2) [g3 b3]

    # ---- convs (MXU, bf16 operands, f32 accumulation) ----------------------
    def conv1():
        return jnp.dot(w1_ref[...], x_bf, preferred_element_type=jnp.float32)

    def conv2(a1):
        # 3x3, stride 1, zero pad 1 as ONE fused K=72 matmul: shifted taps are
        # generated in-register (XLU roll along lanes); zero padding = one
        # multiply by the precomputed 0/1 mask slab.
        taps = []
        for kh in range(3):
            for kw in range(3):
                off = (kh - 1) * W + (kw - 1)
                shift = (-off) % TILE_P
                taps.append(pltpu.roll(a1, shift, axis=1) if shift else a1)
        patches = jnp.concatenate(taps, axis=0) * mask_ref[...]   # (72, TILE_P)
        return jnp.dot(w2_ref[...], patches.astype(jnp.bfloat16),
                       preferred_element_type=jnp.float32)        # (WPAD, TILE_P)

    def conv3(a2):
        return jnp.dot(w3_ref[...], a2.astype(jnp.bfloat16),
                       preferred_element_type=jnp.float32)        # (COUT, TILE_P)

    # ---- BN helpers ---------------------------------------------------------
    def accum_stats(stat_ref, y):
        # Independent lane reductions: sum(y) and sum(y*y) (var = E[y^2]-m^2).
        @pl.when(t == 0)
        def _():
            stat_ref[...] = jnp.zeros_like(stat_ref)
        s = jnp.sum(y, axis=1, keepdims=True)
        q = jnp.sum(y * y, axis=1, keepdims=True)
        stat_ref[...] += jnp.concatenate([s, q], axis=1)

    def finalize_bn(stat_ref, gamma, beta, aff_ref, col):
        # Fused affine: y_bn = y*scale + shift.  Padded channels have
        # gamma = beta = 0 and zero stats -> scale = shift = 0 (stay zero).
        mean = stat_ref[:, 0:1] * inv_p
        var = stat_ref[:, 1:2] * inv_p - mean * mean
        scale = gamma * jax.lax.rsqrt(var + EPS)
        shift = beta - mean * scale
        aff_ref[:, col:col + 1] = scale
        aff_ref[:, col + 1:col + 2] = shift

    def bn_relu(y, aff_ref, col):
        scale = aff_ref[:, col:col + 1]
        shift = aff_ref[:, col + 1:col + 2]
        return jnp.maximum(y * scale + shift, 0.0)

    # ---- phase 0: BN1 statistics -------------------------------------------
    @pl.when(phase == 0)
    def _():
        accum_stats(stat8_ref, conv1())

        @pl.when(t == last_t)
        def _():
            finalize_bn(stat8_ref, bn12[:, 0:1], bn12[:, 1:2], aff12_ref, 0)

        o_ref[...] = jnp.zeros_like(o_ref)   # deterministic placeholder block

    # ---- phase 1: BN2 statistics -------------------------------------------
    @pl.when(phase == 1)
    def _():
        a1 = bn_relu(conv1(), aff12_ref, 0)
        accum_stats(stat8_ref, conv2(a1))

        @pl.when(t == last_t)
        def _():
            finalize_bn(stat8_ref, bn12[:, 2:3], bn12[:, 3:4], aff12_ref, 2)

        o_ref[...] = jnp.zeros_like(o_ref)

    # ---- phase 2: BN3 statistics -------------------------------------------
    @pl.when(phase == 2)
    def _():
        a1 = bn_relu(conv1(), aff12_ref, 0)
        a2 = bn_relu(conv2(a1), aff12_ref, 2)
        accum_stats(stat16_ref, conv3(a2))

        @pl.when(t == last_t)
        def _():
            finalize_bn(stat16_ref, bn3[:, 0:1], bn3[:, 1:2], aff3_ref, 0)

        o_ref[...] = jnp.zeros_like(o_ref)

    # ---- phase 3: full chain + residual + ReLU (lane-dense stores) ---------
    @pl.when(phase == 3)
    def _():
        a1 = bn_relu(conv1(), aff12_ref, 0)
        a2 = bn_relu(conv2(a1), aff12_ref, 2)
        y3 = conv3(a2)
        scale3 = aff3_ref[:, 0:1]
        shift3 = aff3_ref[:, 1:2]
        o_ref[...] = jnp.maximum(y3 * scale3 + shift3 + x, 0.0)


# ---------------------------------------------------------------------------
# Wrapper (all layout plumbing happens here, outside the kernel)
# ---------------------------------------------------------------------------
def _pack_params(params):
    """Transpose weights to (Cout, Cin), im2col-fold the 3x3 weight, pad
    WIDTH->WPAD with zeros, pack BN params.  Padded gamma/beta rows are exactly
    zero (required so padded channels stay identically zero through every BN)."""
    w1, w2, w3, g1, b1, g2, b2, g3, b3 = params

    w1p = jnp.zeros((WPAD, INPLANES), jnp.float32).at[:WIDTH, :].set(w1.T)

    w2t = jnp.transpose(w2, (3, 0, 1, 2))                 # (Cout, kh, kw, Cin)
    w2p = jnp.zeros((WPAD, K2), jnp.float32)
    for tap in range(9):
        kh, kw = divmod(tap, 3)
        w2p = w2p.at[:WIDTH, tap * WPAD:tap * WPAD + WIDTH].set(w2t[:, kh, kw, :])

    w3p = jnp.zeros((COUT, WPAD), jnp.float32).at[:, :WIDTH].set(w3.T)

    bn12 = jnp.zeros((WPAD, 4), jnp.float32)
    bn12 = bn12.at[:WIDTH, 0].set(g1).at[:WIDTH, 1].set(b1)
    bn12 = bn12.at[:WIDTH, 2].set(g2).at[:WIDTH, 3].set(b2)
    bn3 = jnp.stack([g3, b3], axis=1)                     # (COUT, 2)

    # bf16 weights: MXU operands (values are already bf16-representable).
    return (w1p.astype(jnp.bfloat16), w2p.astype(jnp.bfloat16),
            w3p.astype(jnp.bfloat16), bn12, bn3)


def bottleneck(x_nhwc, params):
    w1p, w2p, w3p, bn12, bn3 = _pack_params(params)
    mask = jnp.asarray(_make_tap_mask())                  # (72, TILE_P), f32
    x_t = x_nhwc.reshape(P, INPLANES).T                   # (Cin, P)

    grid_spec = pltpu.PrefetchScalarGridSpec(
        num_scalar_prefetch=0,
        grid=(NUM_PHASES, NUM_TILES),
        in_specs=[
            # x: tiled along the lane axis, pipelined by BlockSpec.
            pl.BlockSpec((INPLANES, TILE_P), lambda p, t: (0, t)),
            # Small resident operands: same block every step -> DMA'd once.
            pl.BlockSpec((WPAD, INPLANES), lambda p, t: (0, 0)),
            pl.BlockSpec((WPAD, K2), lambda p, t: (0, 0)),
            pl.BlockSpec((COUT, WPAD), lambda p, t: (0, 0)),
            pl.BlockSpec((WPAD, 4), lambda p, t: (0, 0)),
            pl.BlockSpec((COUT, 2), lambda p, t: (0, 0)),
            pl.BlockSpec((K2, TILE_P), lambda p, t: (0, 0)),
        ],
        out_specs=pl.BlockSpec((COUT, TILE_P), lambda p, t: (0, t)),
        scratch_shapes=[
            pltpu.VMEM((WPAD, 2), jnp.float32),    # BN1/BN2 [sum, sumsq]
            pltpu.VMEM((COUT, 2), jnp.float32),    # BN3     [sum, sumsq]
            pltpu.VMEM((WPAD, 4), jnp.float32),    # [scale1 shift1 scale2 shift2]
            pltpu.VMEM((COUT, 2), jnp.float32),    # [scale3 shift3]
        ],
    )

    out_t = pl.pallas_call(
        bottleneck_kernel,
        out_shape=jax.ShapeDtypeStruct((COUT, P), jnp.float32),
        grid_spec=grid_spec,
        compiler_params=pltpu.CompilerParams(
            # Sequential on both axes: global training-mode BN stats chain the
            # tiles (and the phases).  With frozen/eval BN the tile axis could
            # be "parallel" to use both v7x TensorCores.
            dimension_semantics=("arbitrary", "arbitrary"),
            vmem_limit_bytes=32 * 1024 * 1024,
        ),
    )(x_t, w1p, w2p, w3p, bn12, bn3, mask)

    return out_t.T.reshape(N, H, W, COUT)                 # back to NHWC


# ---------------------------------------------------------------------------
# Parameters, pure-JAX reference, and self-test
# ---------------------------------------------------------------------------
def make_params(key):
    ks = jax.random.split(key, 9)
    # Weights / input are generated bf16-representable so the single-bf16-pass
    # MXU matmuls (and XLA's default f32 precision) introduce no rounding of
    # the leading operands; kernel vs reference then agree to ~1e-3.
    w1 = _round_bf16(0.2 * jax.random.normal(ks[0], (INPLANES, WIDTH), jnp.float32))
    w2 = _round_bf16(0.2 * jax.random.normal(ks[1], (3, 3, WIDTH, WIDTH), jnp.float32))  # HWIO
    w3 = _round_bf16(0.2 * jax.random.normal(ks[2], (WIDTH, COUT), jnp.float32))
    g1 = 1.0 + 0.1 * jax.random.normal(ks[3], (WIDTH,), jnp.float32)
    b1 = 0.1 * jax.random.normal(ks[4], (WIDTH,), jnp.float32)
    g2 = 1.0 + 0.1 * jax.random.normal(ks[5], (WIDTH,), jnp.float32)
    b2 = 0.1 * jax.random.normal(ks[6], (WIDTH,), jnp.float32)
    g3 = 1.0 + 0.1 * jax.random.normal(ks[7], (COUT,), jnp.float32)
    b3 = 0.1 * jax.random.normal(ks[8], (COUT,), jnp.float32)
    return (w1, w2, w3, g1, b1, g2, b2, g3, b3)


def reference(x, params):
    """Pure-JAX (XLA) reference of the same forward pass, NHWC.  Intermediate
    conv inputs are rounded to bf16 exactly like the kernel's MXU operands, so
    the comparison is well-conditioned."""
    w1, w2, w3, g1, b1, g2, b2, g3, b3 = params

    def bn(y, g, b):
        m = jnp.mean(y, axis=(0, 1, 2), keepdims=True)
        v = jnp.mean((y - m) ** 2, axis=(0, 1, 2), keepdims=True)
        return (y - m) * jax.lax.rsqrt(v + EPS) * g.reshape(1, 1, 1, -1) \
            + b.reshape(1, 1, 1, -1)

    h = jnp.einsum('nhwc,cd->nhwd', x, w1)
    h = jnp.maximum(bn(h, g1, b1), 0.0)
    h = jax.lax.conv_general_dilated(
        _round_bf16(h), w2, window_strides=(1, 1), padding='SAME',
        dimension_numbers=('NHWC', 'HWIO', 'NHWC'))
    h = jnp.maximum(bn(h, g2, b2), 0.0)
    h = jnp.einsum('nhwc,cd->nhwd', _round_bf16(h), w3)
    h = bn(h, g3, b3)
    return jnp.maximum(h + x, 0.0)


if __name__ == "__main__":
    key = jax.random.PRNGKey(0)
    kx, kp = jax.random.split(key)
    x = _round_bf16(jax.random.normal(kx, (N, H, W, INPLANES), jnp.float32))  # NHWC
    params = make_params(kp)

    out = jax.block_until_ready(jax.jit(bottleneck)(x, params))
    ref = jax.block_until_ready(reference(x, params))

    assert out.shape == (N, H, W, COUT)
    max_err = float(jnp.max(jnp.abs(out - ref)))
    assert jnp.allclose(out, ref, atol=2e-2, rtol=2e-2), max_err

    print("KERNEL_OK")
</pallas_src>

<mosaic_0001>
module attributes {stable_mosaic.version = 11 : i64} {
  func.func @bottleneck_kernel(%arg0: i32, %arg1: i32, %arg2: memref<16x256xf32, #tpu.memory_space<vmem>>, %arg3: memref<8x16xbf16, #tpu.memory_space<vmem>>, %arg4: memref<8x72xbf16, #tpu.memory_space<vmem>>, %arg5: memref<16x8xbf16, #tpu.memory_space<vmem>>, %arg6: memref<8x4xf32, #tpu.memory_space<vmem>>, %arg7: memref<16x2xf32, #tpu.memory_space<vmem>>, %arg8: memref<72x256xf32, #tpu.memory_space<vmem>>, %arg9: memref<16x256xf32, #tpu.memory_space<vmem>>, %arg10: memref<8x2xf32, #tpu.memory_space<vmem>>, %arg11: memref<16x2xf32, #tpu.memory_space<vmem>>, %arg12: memref<8x4xf32, #tpu.memory_space<vmem>>, %arg13: memref<16x2xf32, #tpu.memory_space<vmem>>) attributes {dimension_semantics = [#tpu.dimension_semantics<arbitrary>, #tpu.dimension_semantics<arbitrary>], iteration_bounds = array<i64: 4, 4>, scalar_prefetch = 0 : i64, scratch_operands = 4 : i64, tpu.core_type = #tpu.core_type<tc>, window_params = [{transform_indices = @transform_0, window_bounds = array<i64: 16, 256>}, {pipeline_mode = #tpu.pipeline_mode<synchronous>, transform_indices = @transform_1, window_bounds = array<i64: 8, 16>}, {pipeline_mode = #tpu.pipeline_mode<synchronous>, transform_indices = @transform_2, window_bounds = array<i64: 8, 72>}, {pipeline_mode = #tpu.pipeline_mode<synchronous>, transform_indices = @transform_3, window_bounds = array<i64: 16, 8>}, {pipeline_mode = #tpu.pipeline_mode<synchronous>, transform_indices = @transform_4, window_bounds = array<i64: 8, 4>}, {pipeline_mode = #tpu.pipeline_mode<synchronous>, transform_indices = @transform_5, window_bounds = array<i64: 16, 2>}, {pipeline_mode = #tpu.pipeline_mode<synchronous>, transform_indices = @transform_6, window_bounds = array<i64: 72, 256>}, {transform_indices = @transform_7, window_bounds = array<i64: 16, 256>}]} {
    %c0 = arith.constant 0 : index
    %c0_0 = arith.constant 0 : index
    %0 = vector.load %arg2[%c0, %c0_0] : memref<16x256xf32, #tpu.memory_space<vmem>>, vector<16x256xf32>
    %1 = arith.truncf %0 : vector<16x256xf32> to vector<16x256xbf16>
    %c0_1 = arith.constant 0 : index
    %c0_2 = arith.constant 0 : index
    %2 = vector.load %arg6[%c0_1, %c0_2] : memref<8x4xf32, #tpu.memory_space<vmem>>, vector<8x4xf32>
    %c0_3 = arith.constant 0 : index
    %c0_4 = arith.constant 0 : index
    %3 = vector.load %arg7[%c0_3, %c0_4] : memref<16x2xf32, #tpu.memory_space<vmem>>, vector<16x2xf32>
    %c0_i32 = arith.constant 0 : i32
    %4 = arith.cmpi eq, %arg0, %c0_i32 : i32
    %5 = arith.extui %4 : i1 to i32
    %c0_i32_5 = arith.constant 0 : i32
    %6 = arith.cmpi ne, %5, %c0_i32_5 : i32
    scf.if %6 {
      %c0_9 = arith.constant 0 : index
      %c0_10 = arith.constant 0 : index
      %16 = vector.load %arg3[%c0_9, %c0_10] : memref<8x16xbf16, #tpu.memory_space<vmem>>, vector<8x16xbf16>
      %cst = arith.constant dense<0.000000e+00> : vector<8x256xf32>
      %17 = tpu.matmul %16, %1, %cst {dimension_numbers = #tpu.dot_dimension_numbers<[1], [0], [0], [1], [0, 0, 1, 1], [], []>} : vector<8x16xbf16>, vector<16x256xbf16>, vector<8x256xf32> -> vector<8x256xf32>
      %c0_i32_11 = arith.constant 0 : i32
      %18 = arith.cmpi eq, %arg1, %c0_i32_11 : i32
      %19 = arith.extui %18 : i1 to i32
      %c0_i32_12 = arith.constant 0 : i32
      %20 = arith.cmpi ne, %19, %c0_i32_12 : i32
      scf.if %20 {
        %cst_24 = arith.constant 0.000000e+00 : f32
        %35 = vector.broadcast %cst_24 : f32 to vector<8x2xf32>
        %c0_25 = arith.constant 0 : index
        %c0_26 = arith.constant 0 : index
        %36 = vector.load %arg10[%c0_25, %c0_26] : memref<8x2xf32, #tpu.memory_space<vmem>>, vector<8x2xf32>
        tpu.vector_store %arg10[%c0_25, %c0_26], %35 {strides = array<i32>} : memref<8x2xf32, #tpu.memory_space<vmem>>, vector<8x2xf32>,
      } else {
      }
      %cst_13 = arith.constant dense<0.000000e+00> : vector<8xf32>
      %21 = vector.multi_reduction <add>, %17, %cst_13 [1] : vector<8x256xf32> to vector<8xf32>
      %22 = vector.shape_cast %21 : vector<8xf32> to vector<8x1xf32>
      %23 = arith.mulf %17, %17 : vector<8x256xf32>
      %cst_14 = arith.constant dense<0.000000e+00> : vector<8xf32>
      %24 = vector.multi_reduction <add>, %23, %cst_14 [1] : vector<8x256xf32> to vector<8xf32>
      %25 = vector.shape_cast %24 : vector<8xf32> to vector<8x1xf32>
      %c0_15 = arith.constant 0 : index
      %c0_16 = arith.constant 0 : index
      %26 = vector.load %arg10[%c0_15, %c0_16] : memref<8x2xf32, #tpu.memory_space<vmem>>, vector<8x2xf32>
      %27 = tpu.concatenate %22, %25 in 1 : vector<8x1xf32>, vector<8x1xf32> -> vector<8x2xf32>
      %28 = arith.addf %26, %27 : vector<8x2xf32>
      %c0_17 = arith.constant 0 : index
      %c0_18 = arith.constant 0 : index
      %29 = vector.load %arg10[%c0_17, %c0_18] : memref<8x2xf32, #tpu.memory_space<vmem>>, vector<8x2xf32>
      tpu.vector_store %arg10[%c0_17, %c0_18], %28 {strides = array<i32>} : memref<8x2xf32, #tpu.memory_space<vmem>>, vector<8x2xf32>,
      %c3_i32_19 = arith.constant 3 : i32
      %30 = arith.cmpi eq, %arg1, %c3_i32_19 : i32
      %31 = arith.extui %30 : i1 to i32
      %c0_i32_20 = arith.constant 0 : i32
      %32 = arith.cmpi ne, %31, %c0_i32_20 : i32
      scf.if %32 {
        %35 = vector.extract_strided_slice %2 {offsets = [0, 0], sizes = [8, 1], strides = [1, 1]} : vector<8x4xf32> to vector<8x1xf32>
        %36 = vector.extract_strided_slice %2 {offsets = [0, 1], sizes = [8, 1], strides = [1, 1]} : vector<8x4xf32> to vector<8x1xf32>
        %c0_24 = arith.constant 0 : index
        %c0_25 = arith.constant 0 : index
        %37 = vector.load %arg10[%c0_24, %c0_25] : memref<8x2xf32, #tpu.memory_space<vmem>>, vector<8x1xf32>
        %cst_26 = arith.constant 9.765625E-4 : f32
        %38 = vector.broadcast %cst_26 : f32 to vector<8x1xf32>
        %39 = arith.mulf %37, %38 : vector<8x1xf32>
        %c0_27 = arith.constant 0 : index
        %c1 = arith.constant 1 : index
        %40 = vector.load %arg10[%c0_27, %c1] : memref<8x2xf32, #tpu.memory_space<vmem>>, vector<8x1xf32>
        %cst_28 = arith.constant 9.765625E-4 : f32
        %41 = vector.broadcast %cst_28 : f32 to vector<8x1xf32>
        %42 = arith.mulf %40, %41 : vector<8x1xf32>
        %43 = arith.mulf %39, %39 : vector<8x1xf32>
        %44 = arith.subf %42, %43 : vector<8x1xf32>
        %cst_29 = arith.constant 9.99999974E-6 : f32
        %45 = vector.broadcast %cst_29 : f32 to vector<8x1xf32>
        %46 = arith.addf %44, %45 : vector<8x1xf32>
        %47 = math.rsqrt %46 : vector<8x1xf32>
        %48 = arith.mulf %35, %47 : vector<8x1xf32>
        %49 = arith.mulf %39, %48 : vector<8x1xf32>
        %50 = arith.subf %36, %49 : vector<8x1xf32>
        %c0_30 = arith.constant 0 : index
        %c0_31 = arith.constant 0 : index
        %51 = vector.load %arg12[%c0_30, %c0_31] : memref<8x4xf32, #tpu.memory_space<vmem>>, vector<8x1xf32>
        tpu.vector_store %arg12[%c0_30, %c0_31], %48 {strides = array<i32>} : memref<8x4xf32, #tpu.memory_space<vmem>>, vector<8x1xf32>,
        %c0_32 = arith.constant 0 : index
        %c1_33 = arith.constant 1 : index
        %52 = vector.load %arg12[%c0_32, %c1_33] : memref<8x4xf32, #tpu.memory_space<vmem>>, vector<8x1xf32>
        tpu.vector_store %arg12[%c0_32, %c1_33], %50 {strides = array<i32>} : memref<8x4xf32, #tpu.memory_space<vmem>>, vector<8x1xf32>,
      } else {
      }
      %cst_21 = arith.constant 0.000000e+00 : f32
      %33 = vector.broadcast %cst_21 : f32 to vector<16x256xf32>
      %c0_22 = arith.constant 0 : index
      %c0_23 = arith.constant 0 : index
      %34 = vector.load %arg9[%c0_22, %c0_23] : memref<16x256xf32, #tpu.memory_space<vmem>>, vector<16x256xf32>
      tpu.vector_store %arg9[%c0_22, %c0_23], %33 {strides = array<i32>} : memref<16x256xf32, #tpu.memory_space<vmem>>, vector<16x256xf32>,
    } else {
    }
    %c1_i32 = arith.constant 1 : i32
    %7 = arith.cmpi eq, %arg0, %c1_i32 : i32
    %8 = arith.extui %7 : i1 to i32
    %c0_i32_6 = arith.constant 0 : i32
    %9 = arith.cmpi ne, %8, %c0_i32_6 : i32
    scf.if %9 {
      %c0_9 = arith.constant 0 : index
      %c0_10 = arith.constant 0 : index
      %16 = vector.load %arg3[%c0_9, %c0_10] : memref<8x16xbf16, #tpu.memory_space<vmem>>, vector<8x16xbf16>
      %cst = arith.constant dense<0.000000e+00> : vector<8x256xf32>
      %17 = tpu.matmul %16, %1, %cst {dimension_numbers = #tpu.dot_dimension_numbers<[1], [0], [0], [1], [0, 0, 1, 1], [], []>} : vector<8x16xbf16>, vector<16x256xbf16>, vector<8x256xf32> -> vector<8x256xf32>
      %c0_11 = arith.constant 0 : index
      %c0_12 = arith.constant 0 : index
      %18 = vector.load %arg12[%c0_11, %c0_12] : memref<8x4xf32, #tpu.memory_space<vmem>>, vector<8x1xf32>
      %c0_13 = arith.constant 0 : index
      %c1 = arith.constant 1 : index
      %19 = vector.load %arg12[%c0_13, %c1] : memref<8x4xf32, #tpu.memory_space<vmem>>, vector<8x1xf32>
      %20 = vector.broadcast %18 : vector<8x1xf32> to vector<8x256xf32>
      %21 = arith.mulf %17, %20 : vector<8x256xf32>
      %22 = vector.broadcast %19 : vector<8x1xf32> to vector<8x256xf32>
      %23 = arith.addf %21, %22 : vector<8x256xf32>
      %cst_14 = arith.constant 0.000000e+00 : f32
      %24 = vector.broadcast %cst_14 : f32 to vector<8x256xf32>
      %25 = arith.maximumf %23, %24 : vector<8x256xf32>
      %c17_i32 = arith.constant 17 : i32
      %26 = tpu.dynamic_rotate %25 by %c17_i32 dim 1 : vector<8x256xf32>, i32 -> vector<8x256xf32>
      %c16_i32 = arith.constant 16 : i32
      %27 = tpu.dynamic_rotate %25 by %c16_i32 dim 1 : vector<8x256xf32>, i32 -> vector<8x256xf32>
      %c15_i32 = arith.constant 15 : i32
      %28 = tpu.dynamic_rotate %25 by %c15_i32 dim 1 : vector<8x256xf32>, i32 -> vector<8x256xf32>
      %c1_i32_15 = arith.constant 1 : i32
      %29 = tpu.dynamic_rotate %25 by %c1_i32_15 dim 1 : vector<8x256xf32>, i32 -> vector<8x256xf32>
      %c255_i32 = arith.constant 255 : i32
      %30 = tpu.dynamic_rotate %25 by %c255_i32 dim 1 : vector<8x256xf32>, i32 -> vector<8x256xf32>
      %c241_i32 = arith.constant 241 : i32
      %31 = tpu.dynamic_rotate %25 by %c241_i32 dim 1 : vector<8x256xf32>, i32 -> vector<8x256xf32>
      %c240_i32 = arith.constant 240 : i32
      %32 = tpu.dynamic_rotate %25 by %c240_i32 dim 1 : vector<8x256xf32>, i32 -> vector<8x256xf32>
      %c239_i32 = arith.constant 239 : i32
      %33 = tpu.dynamic_rotate %25 by %c239_i32 dim 1 : vector<8x256xf32>, i32 -> vector<8x256xf32>
      %34 = tpu.concatenate %26, %27, %28, %29, %25, %30, %31, %32, %33 in 0 : vector<8x256xf32>, vector<8x256xf32>, vector<8x256xf32>, vector<8x256xf32>, vector<8x256xf32>, vector<8x256xf32>, vector<8x256xf32>, vector<8x256xf32>, vector<8x256xf32> -> vector<72x256xf32>
      %c0_16 = arith.constant 0 : index
      %c0_17 = arith.constant 0 : index
      %35 = vector.load %arg8[%c0_16, %c0_17] : memref<72x256xf32, #tpu.memory_space<vmem>>, vector<72x256xf32>
      %36 = arith.mulf %34, %35 : vector<72x256xf32>
      %c0_18 = arith.constant 0 : index
      %c0_19 = arith.constant 0 : index
      %37 = vector.load %arg4[%c0_18, %c0_19] : memref<8x72xbf16, #tpu.memory_space<vmem>>, vector<8x72xbf16>
      %38 = arith.truncf %36 : vector<72x256xf32> to vector<72x256xbf16>
      %cst_20 = arith.constant dense<0.000000e+00> : vector<8x256xf32>
      %39 = tpu.matmul %37, %38, %cst_20 {dimension_numbers = #tpu.dot_dimension_numbers<[1], [0], [0], [1], [0, 0, 1, 1], [], []>} : vector<8x72xbf16>, vector<72x256xbf16>, vector<8x256xf32> -> vector<8x256xf32>
      %c0_i32_21 = arith.constant 0 : i32
      %40 = arith.cmpi eq, %arg1, %c0_i32_21 : i32
      %41 = arith.extui %40 : i1 to i32
      %c0_i32_22 = arith.constant 0 : i32
      %42 = arith.cmpi ne, %41, %c0_i32_22 : i32
      scf.if %42 {
        %cst_34 = arith.constant 0.000000e+00 : f32
        %57 = vector.broadcast %cst_34 : f32 to vector<8x2xf32>
        %c0_35 = arith.constant 0 : index
        %c0_36 = arith.constant 0 : index
        %58 = vector.load %arg10[%c0_35, %c0_36] : memref<8x2xf32, #tpu.memory_space<vmem>>, vector<8x2xf32>
        tpu.vector_store %arg10[%c0_35, %c0_36], %57 {strides = array<i32>} : memref<8x2xf32, #tpu.memory_space<vmem>>, vector<8x2xf32>,
      } else {
      }
      %cst_23 = arith.constant dense<0.000000e+00> : vector<8xf32>
      %43 = vector.multi_reduction <add>, %39, %cst_23 [1] : vector<8x256xf32> to vector<8xf32>
      %44 = vector.shape_cast %43 : vector<8xf32> to vector<8x1xf32>
      %45 = arith.mulf %39, %39 : vector<8x256xf32>
      %cst_24 = arith.constant dense<0.000000e+00> : vector<8xf32>
      %46 = vector.multi_reduction <add>, %45, %cst_24 [1] : vector<8x256xf32> to vector<8xf32>
      %47 = vector.shape_cast %46 : vector<8xf32> to vector<8x1xf32>
      %c0_25 = arith.constant 0 : index
      %c0_26 = arith.constant 0 : index
      %48 = vector.load %arg10[%c0_25, %c0_26] : memref<8x2xf32, #tpu.memory_space<vmem>>, vector<8x2xf32>
      %49 = tpu.concatenate %44, %47 in 1 : vector<8x1xf32>, vector<8x1xf32> -> vector<8x2xf32>
      %50 = arith.addf %48, %49 : vector<8x2xf32>
      %c0_27 = arith.constant 0 : index
      %c0_28 = arith.constant 0 : index
      %51 = vector.load %arg10[%c0_27, %c0_28] : memref<8x2xf32, #tpu.memory_space<vmem>>, vector<8x2xf32>
      tpu.vector_store %arg10[%c0_27, %c0_28], %50 {strides = array<i32>} : memref<8x2xf32, #tpu.memory_space<vmem>>, vector<8x2xf32>,
      %c3_i32_29 = arith.constant 3 : i32
      %52 = arith.cmpi eq, %arg1, %c3_i32_29 : i32
      %53 = arith.extui %52 : i1 to i32
      %c0_i32_30 = arith.constant 0 : i32
      %54 = arith.cmpi ne, %53, %c0_i32_30 : i32
      scf.if %54 {
        %57 = vector.extract_strided_slice %2 {offsets = [0, 2], sizes = [8, 1], strides = [1, 1]} : vector<8x4xf32> to vector<8x1xf32>
        %58 = vector.extract_strided_slice %2 {offsets = [0, 3], sizes = [8, 1], strides = [1, 1]} : vector<8x4xf32> to vector<8x1xf32>
        %c0_34 = arith.constant 0 : index
        %c0_35 = arith.constant 0 : index
        %59 = vector.load %arg10[%c0_34, %c0_35] : memref<8x2xf32, #tpu.memory_space<vmem>>, vector<8x1xf32>
        %cst_36 = arith.constant 9.765625E-4 : f32
        %60 = vector.broadcast %cst_36 : f32 to vector<8x1xf32>
        %61 = arith.mulf %59, %60 : vector<8x1xf32>
        %c0_37 = arith.constant 0 : index
        %c1_38 = arith.constant 1 : index
        %62 = vector.load %arg10[%c0_37, %c1_38] : memref<8x2xf32, #tpu.memory_space<vmem>>, vector<8x1xf32>
        %cst_39 = arith.constant 9.765625E-4 : f32
        %63 = vector.broadcast %cst_39 : f32 to vector<8x1xf32>
        %64 = arith.mulf %62, %63 : vector<8x1xf32>
        %65 = arith.mulf %61, %61 : vector<8x1xf32>
        %66 = arith.subf %64, %65 : vector<8x1xf32>
        %cst_40 = arith.constant 9.99999974E-6 : f32
        %67 = vector.broadcast %cst_40 : f32 to vector<8x1xf32>
        %68 = arith.addf %66, %67 : vector<8x1xf32>
        %69 = math.rsqrt %68 : vector<8x1xf32>
        %70 = arith.mulf %57, %69 : vector<8x1xf32>
        %71 = arith.mulf %61, %70 : vector<8x1xf32>
        %72 = arith.subf %58, %71 : vector<8x1xf32>
        %c0_41 = arith.constant 0 : index
        %c2 = arith.constant 2 : index
        %73 = vector.load %arg12[%c0_41, %c2] : memref<8x4xf32, #tpu.memory_space<vmem>>, vector<8x1xf32>
        tpu.vector_store %arg12[%c0_41, %c2], %70 {strides = array<i32>} : memref<8x4xf32, #tpu.memory_space<vmem>>, vector<8x1xf32>,
        %c0_42 = arith.constant 0 : index
        %c3 = arith.constant 3 : index
        %74 = vector.load %arg12[%c0_42, %c3] : memref<8x4xf32, #tpu.memory_space<vmem>>, vector<8x1xf32>
        tpu.vector_store %arg12[%c0_42, %c3], %72 {strides = array<i32>} : memref<8x4xf32, #tpu.memory_space<vmem>>, vector<8x1xf32>,
      } else {
      }
      %cst_31 = arith.constant 0.000000e+00 : f32
      %55 = vector.broadcast %cst_31 : f32 to vector<16x256xf32>
      %c0_32 = arith.constant 0 : index
      %c0_33 = arith.constant 0 : index
      %56 = vector.load %arg9[%c0_32, %c0_33] : memref<16x256xf32, #tpu.memory_space<vmem>>, vector<16x256xf32>
      tpu.vector_store %arg9[%c0_32, %c0_33], %55 {strides = array<i32>} : memref<16x256xf32, #tpu.memory_space<vmem>>, vector<16x256xf32>,
    } else {
    }
    %c2_i32 = arith.constant 2 : i32
    %10 = arith.cmpi eq, %arg0, %c2_i32 : i32
    %11 = arith.extui %10 : i1 to i32
    %c0_i32_7 = arith.constant 0 : i32
    %12 = arith.cmpi ne, %11, %c0_i32_7 : i32
    scf.if %12 {
      %c0_9 = arith.constant 0 : index
      %c0_10 = arith.constant 0 : index
      %16 = vector.load %arg3[%c0_9, %c0_10] : memref<8x16xbf16, #tpu.memory_space<vmem>>, vector<8x16xbf16>
      %cst = arith.constant dense<0.000000e+00> : vector<8x256xf32>
      %17 = tpu.matmul %16, %1, %cst {dimension_numbers = #tpu.dot_dimension_numbers<[1], [0], [0], [1], [0, 0, 1, 1], [], []>} : vector<8x16xbf16>, vector<16x256xbf16>, vector<8x256xf32> -> vector<8x256xf32>
      %c0_11 = arith.constant 0 : index
      %c0_12 = arith.constant 0 : index
      %18 = vector.load %arg12[%c0_11, %c0_12] : memref<8x4xf32, #tpu.memory_space<vmem>>, vector<8x1xf32>
      %c0_13 = arith.constant 0 : index
      %c1 = arith.constant 1 : index
      %19 = vector.load %arg12[%c0_13, %c1] : memref<8x4xf32, #tpu.memory_space<vmem>>, vector<8x1xf32>
      %20 = vector.broadcast %18 : vector<8x1xf32> to vector<8x256xf32>
      %21 = arith.mulf %17, %20 : vector<8x256xf32>
      %22 = vector.broadcast %19 : vector<8x1xf32> to vector<8x256xf32>
      %23 = arith.addf %21, %22 : vector<8x256xf32>
      %cst_14 = arith.constant 0.000000e+00 : f32
      %24 = vector.broadcast %cst_14 : f32 to vector<8x256xf32>
      %25 = arith.maximumf %23, %24 : vector<8x256xf32>
      %c17_i32 = arith.constant 17 : i32
      %26 = tpu.dynamic_rotate %25 by %c17_i32 dim 1 : vector<8x256xf32>, i32 -> vector<8x256xf32>
      %c16_i32 = arith.constant 16 : i32
      %27 = tpu.dynamic_rotate %25 by %c16_i32 dim 1 : vector<8x256xf32>, i32 -> vector<8x256xf32>
      %c15_i32 = arith.constant 15 : i32
      %28 = tpu.dynamic_rotate %25 by %c15_i32 dim 1 : vector<8x256xf32>, i32 -> vector<8x256xf32>
      %c1_i32_15 = arith.constant 1 : i32
      %29 = tpu.dynamic_rotate %25 by %c1_i32_15 dim 1 : vector<8x256xf32>, i32 -> vector<8x256xf32>
      %c255_i32 = arith.constant 255 : i32
      %30 = tpu.dynamic_rotate %25 by %c255_i32 dim 1 : vector<8x256xf32>, i32 -> vector<8x256xf32>
      %c241_i32 = arith.constant 241 : i32
      %31 = tpu.dynamic_rotate %25 by %c241_i32 dim 1 : vector<8x256xf32>, i32 -> vector<8x256xf32>
      %c240_i32 = arith.constant 240 : i32
      %32 = tpu.dynamic_rotate %25 by %c240_i32 dim 1 : vector<8x256xf32>, i32 -> vector<8x256xf32>
      %c239_i32 = arith.constant 239 : i32
      %33 = tpu.dynamic_rotate %25 by %c239_i32 dim 1 : vector<8x256xf32>, i32 -> vector<8x256xf32>
      %34 = tpu.concatenate %26, %27, %28, %29, %25, %30, %31, %32, %33 in 0 : vector<8x256xf32>, vector<8x256xf32>, vector<8x256xf32>, vector<8x256xf32>, vector<8x256xf32>, vector<8x256xf32>, vector<8x256xf32>, vector<8x256xf32>, vector<8x256xf32> -> vector<72x256xf32>
      %c0_16 = arith.constant 0 : index
      %c0_17 = arith.constant 0 : index
      %35 = vector.load %arg8[%c0_16, %c0_17] : memref<72x256xf32, #tpu.memory_space<vmem>>, vector<72x256xf32>
      %36 = arith.mulf %34, %35 : vector<72x256xf32>
      %c0_18 = arith.constant 0 : index
      %c0_19 = arith.constant 0 : index
      %37 = vector.load %arg4[%c0_18, %c0_19] : memref<8x72xbf16, #tpu.memory_space<vmem>>, vector<8x72xbf16>
      %38 = arith.truncf %36 : vector<72x256xf32> to vector<72x256xbf16>
      %cst_20 = arith.constant dense<0.000000e+00> : vector<8x256xf32>
      %39 = tpu.matmul %37, %38, %cst_20 {dimension_numbers = #tpu.dot_dimension_numbers<[1], [0], [0], [1], [0, 0, 1, 1], [], []>} : vector<8x72xbf16>, vector<72x256xbf16>, vector<8x256xf32> -> vector<8x256xf32>
      %c0_21 = arith.constant 0 : index
      %c2 = arith.constant 2 : index
      %40 = vector.load %arg12[%c0_21, %c2] : memref<8x4xf32, #tpu.memory_space<vmem>>, vector<8x1xf32>
      %c0_22 = arith.constant 0 : index
      %c3 = arith.constant 3 : index
      %41 = vector.load %arg12[%c0_22, %c3] : memref<8x4xf32, #tpu.memory_space<vmem>>, vector<8x1xf32>
      %42 = vector.broadcast %40 : vector<8x1xf32> to vector<8x256xf32>
      %43 = arith.mulf %39, %42 : vector<8x256xf32>
      %44 = vector.broadcast %41 : vector<8x1xf32> to vector<8x256xf32>
      %45 = arith.addf %43, %44 : vector<8x256xf32>
      %cst_23 = arith.constant 0.000000e+00 : f32
      %46 = vector.broadcast %cst_23 : f32 to vector<8x256xf32>
      %47 = arith.maximumf %45, %46 : vector<8x256xf32>
      %c0_24 = arith.constant 0 : index
      %c0_25 = arith.constant 0 : index
      %48 = vector.load %arg5[%c0_24, %c0_25] : memref<16x8xbf16, #tpu.memory_space<vmem>>, vector<16x8xbf16>
      %49 = arith.truncf %47 : vector<8x256xf32> to vector<8x256xbf16>
      %cst_26 = arith.constant dense<0.000000e+00> : vector<16x256xf32>
      %50 = tpu.matmul %48, %49, %cst_26 {dimension_numbers = #tpu.dot_dimension_numbers<[1], [0], [0], [1], [0, 0, 1, 1], [], []>} : vector<16x8xbf16>, vector<8x256xbf16>, vector<16x256xf32> -> vector<16x256xf32>
      %c0_i32_27 = arith.constant 0 : i32
      %51 = arith.cmpi eq, %arg1, %c0_i32_27 : i32
      %52 = arith.extui %51 : i1 to i32
      %c0_i32_28 = arith.constant 0 : i32
      %53 = arith.cmpi ne, %52, %c0_i32_28 : i32
      scf.if %53 {
        %cst_40 = arith.constant 0.000000e+00 : f32
        %68 = vector.broadcast %cst_40 : f32 to vector<16x2xf32>
        %c0_41 = arith.constant 0 : index
        %c0_42 = arith.constant 0 : index
        %69 = vector.load %arg11[%c0_41, %c0_42] : memref<16x2xf32, #tpu.memory_space<vmem>>, vector<16x2xf32>
        tpu.vector_store %arg11[%c0_41, %c0_42], %68 {strides = array<i32>} : memref<16x2xf32, #tpu.memory_space<vmem>>, vector<16x2xf32>,
      } else {
      }
      %cst_29 = arith.constant dense<0.000000e+00> : vector<16xf32>
      %54 = vector.multi_reduction <add>, %50, %cst_29 [1] : vector<16x256xf32> to vector<16xf32>
      %55 = vector.shape_cast %54 : vector<16xf32> to vector<16x1xf32>
      %56 = arith.mulf %50, %50 : vector<16x256xf32>
      %cst_30 = arith.constant dense<0.000000e+00> : vector<16xf32>
      %57 = vector.multi_reduction <add>, %56, %cst_30 [1] : vector<16x256xf32> to vector<16xf32>
      %58 = vector.shape_cast %57 : vector<16xf32> to vector<16x1xf32>
      %c0_31 = arith.constant 0 : index
      %c0_32 = arith.constant 0 : index
      %59 = vector.load %arg11[%c0_31, %c0_32] : memref<16x2xf32, #tpu.memory_space<vmem>>, vector<16x2xf32>
      %60 = tpu.concatenate %55, %58 in 1 : vector<16x1xf32>, vector<16x1xf32> -> vector<16x2xf32>
      %61 = arith.addf %59, %60 : vector<16x2xf32>
      %c0_33 = arith.constant 0 : index
      %c0_34 = arith.constant 0 : index
      %62 = vector.load %arg11[%c0_33, %c0_34] : memref<16x2xf32, #tpu.memory_space<vmem>>, vector<16x2xf32>
      tpu.vector_store %arg11[%c0_33, %c0_34], %61 {strides = array<i32>} : memref<16x2xf32, #tpu.memory_space<vmem>>, vector<16x2xf32>,
      %c3_i32_35 = arith.constant 3 : i32
      %63 = arith.cmpi eq, %arg1, %c3_i32_35 : i32
      %64 = arith.extui %63 : i1 to i32
      %c0_i32_36 = arith.constant 0 : i32
      %65 = arith.cmpi ne, %64, %c0_i32_36 : i32
      scf.if %65 {
        %68 = vector.extract_strided_slice %3 {offsets = [0, 0], sizes = [16, 1], strides = [1, 1]} : vector<16x2xf32> to vector<16x1xf32>
        %69 = vector.extract_strided_slice %3 {offsets = [0, 1], sizes = [16, 1], strides = [1, 1]} : vector<16x2xf32> to vector<16x1xf32>
        %c0_40 = arith.constant 0 : index
        %c0_41 = arith.constant 0 : index
        %70 = vector.load %arg11[%c0_40, %c0_41] : memref<16x2xf32, #tpu.memory_space<vmem>>, vector<16x1xf32>
        %cst_42 = arith.constant 9.765625E-4 : f32
        %71 = vector.broadcast %cst_42 : f32 to vector<16x1xf32>
        %72 = arith.mulf %70, %71 : vector<16x1xf32>
        %c0_43 = arith.constant 0 : index
        %c1_44 = arith.constant 1 : index
        %73 = vector.load %arg11[%c0_43, %c1_44] : memref<16x2xf32, #tpu.memory_space<vmem>>, vector<16x1xf32>
        %cst_45 = arith.constant 9.765625E-4 : f32
        %74 = vector.broadcast %cst_45 : f32 to vector<16x1xf32>
        %75 = arith.mulf %73, %74 : vector<16x1xf32>
        %76 = arith.mulf %72, %72 : vector<16x1xf32>
        %77 = arith.subf %75, %76 : vector<16x1xf32>
        %cst_46 = arith.constant 9.99999974E-6 : f32
        %78 = vector.broadcast %cst_46 : f32 to vector<16x1xf32>
        %79 = arith.addf %77, %78 : vector<16x1xf32>
        %80 = math.rsqrt %79 : vector<16x1xf32>
        %81 = arith.mulf %68, %80 : vector<16x1xf32>
        %82 = arith.mulf %72, %81 : vector<16x1xf32>
        %83 = arith.subf %69, %82 : vector<16x1xf32>
        %c0_47 = arith.constant 0 : index
        %c0_48 = arith.constant 0 : index
        %84 = vector.load %arg13[%c0_47, %c0_48] : memref<16x2xf32, #tpu.memory_space<vmem>>, vector<16x1xf32>
        tpu.vector_store %arg13[%c0_47, %c0_48], %81 {strides = array<i32>} : memref<16x2xf32, #tpu.memory_space<vmem>>, vector<16x1xf32>,
        %c0_49 = arith.constant 0 : index
        %c1_50 = arith.constant 1 : index
        %85 = vector.load %arg13[%c0_49, %c1_50] : memref<16x2xf32, #tpu.memory_space<vmem>>, vector<16x1xf32>
        tpu.vector_store %arg13[%c0_49, %c1_50], %83 {strides = array<i32>} : memref<16x2xf32, #tpu.memory_space<vmem>>, vector<16x1xf32>,
      } else {
      }
      %cst_37 = arith.constant 0.000000e+00 : f32
      %66 = vector.broadcast %cst_37 : f32 to vector<16x256xf32>
      %c0_38 = arith.constant 0 : index
      %c0_39 = arith.constant 0 : index
      %67 = vector.load %arg9[%c0_38, %c0_39] : memref<16x256xf32, #tpu.memory_space<vmem>>, vector<16x256xf32>
      tpu.vector_store %arg9[%c0_38, %c0_39], %66 {strides = array<i32>} : memref<16x256xf32, #tpu.memory_space<vmem>>, vector<16x256xf32>,
    } else {
    }
    %c3_i32 = arith.constant 3 : i32
    %13 = arith.cmpi eq, %arg0, %c3_i32 : i32
    %14 = arith.extui %13 : i1 to i32
    %c0_i32_8 = arith.constant 0 : i32
    %15 = arith.cmpi ne, %14, %c0_i32_8 : i32
    scf.if %15 {
      %c0_9 = arith.constant 0 : index
      %c0_10 = arith.constant 0 : index
      %16 = vector.load %arg3[%c0_9, %c0_10] : memref<8x16xbf16, #tpu.memory_space<vmem>>, vector<8x16xbf16>
      %cst = arith.constant dense<0.000000e+00> : vector<8x256xf32>
      %17 = tpu.matmul %16, %1, %cst {dimension_numbers = #tpu.dot_dimension_numbers<[1], [0], [0], [1], [0, 0, 1, 1], [], []>} : vector<8x16xbf16>, vector<16x256xbf16>, vector<8x256xf32> -> vector<8x256xf32>
      %c0_11 = arith.constant 0 : index
      %c0_12 = arith.constant 0 : index
      %18 = vector.load %arg12[%c0_11, %c0_12] : memref<8x4xf32, #tpu.memory_space<vmem>>, vector<8x1xf32>
      %c0_13 = arith.constant 0 : index
      %c1 = arith.constant 1 : index
      %19 = vector.load %arg12[%c0_13, %c1] : memref<8x4xf32, #tpu.memory_space<vmem>>, vector<8x1xf32>
      %20 = vector.broadcast %18 : vector<8x1xf32> to vector<8x256xf32>
      %21 = arith.mulf %17, %20 : vector<8x256xf32>
      %22 = vector.broadcast %19 : vector<8x1xf32> to vector<8x256xf32>
      %23 = arith.addf %21, %22 : vector<8x256xf32>
      %cst_14 = arith.constant 0.000000e+00 : f32
      %24 = vector.broadcast %cst_14 : f32 to vector<8x256xf32>
      %25 = arith.maximumf %23, %24 : vector<8x256xf32>
      %c17_i32 = arith.constant 17 : i32
      %26 = tpu.dynamic_rotate %25 by %c17_i32 dim 1 : vector<8x256xf32>, i32 -> vector<8x256xf32>
      %c16_i32 = arith.constant 16 : i32
      %27 = tpu.dynamic_rotate %25 by %c16_i32 dim 1 : vector<8x256xf32>, i32 -> vector<8x256xf32>
      %c15_i32 = arith.constant 15 : i32
      %28 = tpu.dynamic_rotate %25 by %c15_i32 dim 1 : vector<8x256xf32>, i32 -> vector<8x256xf32>
      %c1_i32_15 = arith.constant 1 : i32
      %29 = tpu.dynamic_rotate %25 by %c1_i32_15 dim 1 : vector<8x256xf32>, i32 -> vector<8x256xf32>
      %c255_i32 = arith.constant 255 : i32
      %30 = tpu.dynamic_rotate %25 by %c255_i32 dim 1 : vector<8x256xf32>, i32 -> vector<8x256xf32>
      %c241_i32 = arith.constant 241 : i32
      %31 = tpu.dynamic_rotate %25 by %c241_i32 dim 1 : vector<8x256xf32>, i32 -> vector<8x256xf32>
      %c240_i32 = arith.constant 240 : i32
      %32 = tpu.dynamic_rotate %25 by %c240_i32 dim 1 : vector<8x256xf32>, i32 -> vector<8x256xf32>
      %c239_i32 = arith.constant 239 : i32
      %33 = tpu.dynamic_rotate %25 by %c239_i32 dim 1 : vector<8x256xf32>, i32 -> vector<8x256xf32>
      %34 = tpu.concatenate %26, %27, %28, %29, %25, %30, %31, %32, %33 in 0 : vector<8x256xf32>, vector<8x256xf32>, vector<8x256xf32>, vector<8x256xf32>, vector<8x256xf32>, vector<8x256xf32>, vector<8x256xf32>, vector<8x256xf32>, vector<8x256xf32> -> vector<72x256xf32>
      %c0_16 = arith.constant 0 : index
      %c0_17 = arith.constant 0 : index
      %35 = vector.load %arg8[%c0_16, %c0_17] : memref<72x256xf32, #tpu.memory_space<vmem>>, vector<72x256xf32>
      %36 = arith.mulf %34, %35 : vector<72x256xf32>
      %c0_18 = arith.constant 0 : index
      %c0_19 = arith.constant 0 : index
      %37 = vector.load %arg4[%c0_18, %c0_19] : memref<8x72xbf16, #tpu.memory_space<vmem>>, vector<8x72xbf16>
      %38 = arith.truncf %36 : vector<72x256xf32> to vector<72x256xbf16>
      %cst_20 = arith.constant dense<0.000000e+00> : vector<8x256xf32>
      %39 = tpu.matmul %37, %38, %cst_20 {dimension_numbers = #tpu.dot_dimension_numbers<[1], [0], [0], [1], [0, 0, 1, 1], [], []>} : vector<8x72xbf16>, vector<72x256xbf16>, vector<8x256xf32> -> vector<8x256xf32>
      %c0_21 = arith.constant 0 : index
      %c2 = arith.constant 2 : index
      %40 = vector.load %arg12[%c0_21, %c2] : memref<8x4xf32, #tpu.memory_space<vmem>>, vector<8x1xf32>
      %c0_22 = arith.constant 0 : index
      %c3 = arith.constant 3 : index
      %41 = vector.load %arg12[%c0_22, %c3] : memref<8x4xf32, #tpu.memory_space<vmem>>, vector<8x1xf32>
      %42 = vector.broadcast %40 : vector<8x1xf32> to vector<8x256xf32>
      %43 = arith.mulf %39, %42 : vector<8x256xf32>
      %44 = vector.broadcast %41 : vector<8x1xf32> to vector<8x256xf32>
      %45 = arith.addf %43, %44 : vector<8x256xf32>
      %cst_23 = arith.constant 0.000000e+00 : f32
      %46 = vector.broadcast %cst_23 : f32 to vector<8x256xf32>
      %47 = arith.maximumf %45, %46 : vector<8x256xf32>
      %c0_24 = arith.constant 0 : index
      %c0_25 = arith.constant 0 : index
      %48 = vector.load %arg5[%c0_24, %c0_25] : memref<16x8xbf16, #tpu.memory_space<vmem>>, vector<16x8xbf16>
      %49 = arith.truncf %47 : vector<8x256xf32> to vector<8x256xbf16>
      %cst_26 = arith.constant dense<0.000000e+00> : vector<16x256xf32>
      %50 = tpu.matmul %48, %49, %cst_26 {dimension_numbers = #tpu.dot_dimension_numbers<[1], [0], [0], [1], [0, 0, 1, 1], [], []>} : vector<16x8xbf16>, vector<8x256xbf16>, vector<16x256xf32> -> vector<16x256xf32>
      %c0_27 = arith.constant 0 : index
      %c0_28 = arith.constant 0 : index
      %51 = vector.load %arg13[%c0_27, %c0_28] : memref<16x2xf32, #tpu.memory_space<vmem>>, vector<16x1xf32>
      %c0_29 = arith.constant 0 : index
      %c1_30 = arith.constant 1 : index
      %52 = vector.load %arg13[%c0_29, %c1_30] : memref<16x2xf32, #tpu.memory_space<vmem>>, vector<16x1xf32>
      %53 = vector.broadcast %51 : vector<16x1xf32> to vector<16x256xf32>
      %54 = arith.mulf %50, %53 : vector<16x256xf32>
      %55 = vector.broadcast %52 : vector<16x1xf32> to vector<16x256xf32>
      %56 = arith.addf %54, %55 : vector<16x256xf32>
      %57 = arith.addf %56, %0 : vector<16x256xf32>
      %cst_31 = arith.constant 0.000000e+00 : f32
      %58 = vector.broadcast %cst_31 : f32 to vector<16x256xf32>
      %59 = arith.maximumf %57, %58 : vector<16x256xf32>
      %c0_32 = arith.constant 0 : index
      %c0_33 = arith.constant 0 : index
      %60 = vector.load %arg9[%c0_32, %c0_33] : memref<16x256xf32, #tpu.memory_space<vmem>>, vector<16x256xf32>
      tpu.vector_store %arg9[%c0_32, %c0_33], %59 {strides = array<i32>} : memref<16x256xf32, #tpu.memory_space<vmem>>, vector<16x256xf32>,
    } else {
    }
    return
  }
  func.func @transform_0(%arg0: i32, %arg1: i32) -> (i32, i32) {
    %c0_i32 = arith.constant 0 : i32
    %c0_i32_0 = arith.constant 0 : i32
    return %c0_i32, %arg1 : i32, i32
  }
  func.func @transform_1(%arg0: i32, %arg1: i32) -> (i32, i32) {
    %c0_i32 = arith.constant 0 : i32
    %c0_i32_0 = arith.constant 0 : i32
    %c0_i32_1 = arith.constant 0 : i32
    return %c0_i32, %c0_i32_0 : i32, i32
  }
  func.func @transform_2(%arg0: i32, %arg1: i32) -> (i32, i32) {
    %c0_i32 = arith.constant 0 : i32
    %c0_i32_0 = arith.constant 0 : i32
    %c0_i32_1 = arith.constant 0 : i32
    return %c0_i32, %c0_i32_0 : i32, i32
  }
  func.func @transform_3(%arg0: i32, %arg1: i32) -> (i32, i32) {
    %c0_i32 = arith.constant 0 : i32
    %c0_i32_0 = arith.constant 0 : i32
    %c0_i32_1 = arith.constant 0 : i32
    return %c0_i32, %c0_i32_0 : i32, i32
  }
  func.func @transform_4(%arg0: i32, %arg1: i32) -> (i32, i32) {
    %c0_i32 = arith.constant 0 : i32
    %c0_i32_0 = arith.constant 0 : i32
    %c0_i32_1 = arith.constant 0 : i32
    return %c0_i32, %c0_i32_0 : i32, i32
  }
  func.func @transform_5(%arg0: i32, %arg1: i32) -> (i32, i32) {
    %c0_i32 = arith.constant 0 : i32
    %c0_i32_0 = arith.constant 0 : i32
    %c0_i32_1 = arith.constant 0 : i32
    return %c0_i32, %c0_i32_0 : i32, i32
  }
  func.func @transform_6(%arg0: i32, %arg1: i32) -> (i32, i32) {
    %c0_i32 = arith.constant 0 : i32
    %c0_i32_0 = arith.constant 0 : i32
    %c0_i32_1 = arith.constant 0 : i32
    return %c0_i32, %c0_i32_0 : i32, i32
  }
  func.func @transform_7(%arg0: i32, %arg1: i32) -> (i32, i32) {
    %c0_i32 = arith.constant 0 : i32
    %c0_i32_0 = arith.constant 0 : i32
    return %c0_i32, %arg1 : i32, i32
  }
}

</mosaic_0001>

<bundles_post_ra>
// kernel: bottleneck.1
= control target key start
LH: loop header
LB: loop body
LE: loop exit
PB: predicated region body
PF: predicated region fallthrough
CT: control target
= control target key end

     0   :  { %s1758_s24 = smov 0   ;;  %s1760_s25 = smov 0   ;;  %s2255_s0 = inlined_call_operand.vmem [shape: f32[16,1024], index: 0, kind: input, shape index: {}]   ;;  %s2256_s1 = inlined_call_operand.vmem [shape: bf16[8,16], index: 1, kind: input, shape index: {}]   ;;  %s2257_s2 = inlined_call_operand.vmem [shape: bf16[8,72], index: 2, kind: input, shape index: {}]   ;;  %s2258_s3 = inlined_call_operand.vmem [shape: bf16[16,8], index: 3, kind: input, shape index: {}]   ;;  %s2259_s4 = inlined_call_operand.vmem [shape: f32[8,4], index: 4, kind: input, shape index: {}]   ;;  %s2260_s5 = inlined_call_operand.vmem [shape: f32[16,2], index: 5, kind: input, shape index: {}]   ;;  %s2261_s6 = inlined_call_operand.vmem [shape: f32[72,256], index: 6, kind: input, shape index: {}]   ;;  %s2262_s7 = inlined_call_operand.vmem [shape: f32[16,1024], index: 7, kind: output, shape index: {}]  }
   0x1   :  { %s1762_s26 = smov 0   ;;  %s1764_s27 = smov 0  }
   0x2   :  { %s1766_s28 = smov 0   ;;  %s1768_s29 = smov 0  }
   0x3   :  { %s1770_s30 = smov 0  }
   0x4 LB: > { %s1433_s8 = sadd.s32 4294967295, %s1669_s30   ;;  %s26_s9 = sadd.s32 1, %s1661_s28  ;;  %s1669_s30 = sphi %s1770_s30, %s17_s30   ;;  %s1665_s29 = sphi %s1768_s29, %s2269_s29   ;;  %s1661_s28 = sphi %s1766_s28, %s2268_s28   ;;  %s1657_s27 = sphi %s1764_s27, %s2267_s27   ;;  %s1653_s26 = sphi %s1762_s26, %s2266_s26   ;;  %s1649_s25 = sphi %s1760_s25, %s2265_s25   ;;  %s1645_s24 = sphi %s1758_s24, %s2264_s24  }
   0x5   : > { %p27_p0 = scmp.ge.s32.totalorder %s26_s9, 4  ;;  %s29_s10 = sadd.s32 1, %s1665_s29 }
   0x6   : > { %s36_s11 = sadd.s32 1, %s1649_s25  ;;  %p43_p1 = scmp.ne.s32.totalorder %s1649_s25, %s1645_s24 }
   0x7   : > { %s2271_s9 = smov (%p27_p0, %s26_s9), 0  ;;  %s2273_s10 = smov (!%p27_p0, %s29_s10), %s1665_s29 }
   0x8   : > { %s33_s12 = ssub.s32 %s1661_s28, %s2271_s9  ;;  %p44_p2 = scmp.eq.s32.totalorder %s1669_s30, 0 }
   0x9   : > { %p31_p3 = scmp.ge.s32.totalorder %s2273_s10, 4  ;;  %p34_p4 = scmp.eq.s32.totalorder %s33_s12, 0 }
   0xa   : > { %p45_p5 = por %p44_p2, %p43_p1  ;;  %p199_p6 = scmp.eq.s32.totalorder %s1433_s8, 15 }
   0xb   : > { %s2275_s10 = smov (%p31_p3, %s2273_s10), 0  ;;  %p1436_p8 = scmp.ge.s32.totalorder %s1669_s30, 16 }
   0xc   : > { %s1808_s13 = scalar_select %p34_p4, %s1649_s25, %s36_s11  }
   0xd   : > { %p1810_p7 = por %p199_p6, %p43_p1  ;;  %239 = sbr.rel (%p1436_p8) target bundleno = 26 (0x1a), region = 40 }
  0x12   : > { %242 = sbr.rel (!%p45_p5) target bundleno = 26 (0x1a), region = 44  ;;  %s244_s15 = sand.u32 (%p45_p5), 1, %s1649_s25  }
  0x13   : > { %s1484_s16 = sshll.u32 (%p45_p5), %s1661_s28, 4  ;;  %s1437_s17 = sshll.u32 (%p45_p5), %s244_s15, 5 }
  0x14   : > { %s249_s20 = scalar_lea.vmem (%p45_p5), %s2255_s0, %s1484_s16  ;;  %s246_s21 = scalar_lea.vmem (%p45_p5), [#allocation6], %s1437_s17 }
  0x15   : > { %v262_v0 = vld [vmem:[%s249_s20] sm:$0xff] (%p45_p5)  ;;  %v264_v1 = vld [vmem:[%s249_s20 + $0x8] sm:$0xff] (%p45_p5) }
  0x16   : > { %v266_v2 = vld [vmem:[%s249_s20 + $0x40] sm:$0xff] (%p45_p5)  ;;  %263 = vst [vmem:[%s246_s21] sm:$0xff] (%p45_p5), %v262_v0  ;;  %v268_v3 = vld [vmem:[%s249_s20 + $0x48] sm:$0xff] (%p45_p5) }
  0x17   : > { %265 = vst [vmem:[%s246_s21 + $0x8] sm:$0xff] %v264_v1 }
  0x18   : > { %267 = vst [vmem:[%s246_s21 + $0x10] sm:$0xff] %v266_v2 }
  0x19   : > { %269 = vst [vmem:[%s246_s21 + $0x18] sm:$0xff] %v268_v3 }
  0x1a PF: > { %p1440_p9 = scmp.ge.s32.totalorder %s1669_s30, 1  ;;  %p274_p10 = scmp.lt.s32.totalorder %s1669_s30, 17 }
  0x1c   : > { %p275_p11 = pnand %p1440_p9, %p274_p10 }
  0x1d   : > { %s281_s22 = sand.u32 (!%p275_p11), 1, %s1645_s24   ;;  %p1443_p12 = scmp.ne.s32.totalorder (!%p275_p11), %s1657_s27, 0 }
  0x1e   : > { %278 = sbr.rel (%p275_p11) target bundleno = 3471 (0xd8f), region = 67  ;;  %s1441_s17 = sshll.u32 (!%p275_p11), %s281_s22, 5 }
  0x1f   : > { %s283_s18 = scalar_lea.vmem (!%p275_p11), [#allocation6], %s1441_s17  ;;  %s1854_s24 = scalar_lea.vmem (!%p275_p11), [#allocation7], %s1441_s17 }
  0x23   : > { %v1826_v4 = vld [vmem:[%s2259_s4] sm:$0xff]  ;;  %v1836_v6 = vld [vmem:[%s2260_s5 + $0x8] sm:$0xff]  ;;  %v1838_v7 = vld [vmem:[%s283_s18] sm:$0xff]  ;;  %326 = sbr.rel (%p1443_p12) target bundleno = 699 (0x2bb), region = 75  ;;  %p1446_p13 = scmp.ne.s32.totalorder (!%p1443_p12), %s1653_s26, 0 }
  0x24   : > { %v1831_v5 = vld [vmem:[%s2260_s5] sm:$0xff]  ;;  %v1840_v8 = vld [vmem:[%s283_s18 + $0x8] sm:$0xff]  ;;  %v1844_v10 = vld [vmem:[%s283_s18 + $0x18] sm:$0xff] }
  0x25   : > { %v1842_v9 = vld [vmem:[%s283_s18 + $0x10] sm:$0xff]  ;;  %v1852_v12 = vpack.c.bf16 %v1844_v10, %v1840_v8 }
  0x26   : > { %v1848_v11 = vpack.c.bf16 %v1842_v9, %v1838_v7 }
  0x28   : > { %339 = vmatpush.bf16.msra.mxu0 %v1848_v11  ;;  %352 = vmatpush.bf16.msra.mxu1 %v1852_v12  ;;  %v327_v13 = vld [vmem:[%s2256_s1] sm:$0xf]  ;;  %vm328_vm0 = vcmask 130048  }
  0x2b   : > { %1444 = vmatmul.msk.bf16.vlgmr.msra.gmra.mxu0 %vm328_vm0, %v327_v13  ;;  %1445 = vmatmul.msk.bf16.vlgmr.msra.gmra.mxu1 %vm328_vm0, %v327_v13 }
  0xa8   : > { %v341_v14 = vpop.f32.mrf.mxu0  ;;  %v354_v15 = vpop.f32.mrf.mxu1 }
  0xac   : > { %361 = sbr.rel (%p1446_p13) target bundleno = 179 (0xb3), region = 79 }
  0xb0   : > { %v343_v16 = vpop.f32.mrf.mxu0  ;;  %v356_v17 = vpop.f32.mrf.mxu1 }
  0xb1   : > { %vm362_vm1 = vcmask 15360   ;;  %v1671_v18 = vmov 0.0  }
  0xb2   : > { %363 = vst.msk [vmem:[#allocation2] sm:$0xff] %vm362_vm1, %v1671_v18 }
  0xb3 PF: > { %v364_v19 = vadd.f32 %v354_v15, %v341_v14  ;;  %v367_v20 = vmul.f32 %v341_v14, %v341_v14  ;;  %v368_v21 = vmul.f32 %v354_v15, %v354_v15  ;;  %vm373_vm2 = vcmask 7168   ;;  %p1447_p0 = scmp.ne.s32.totalorder %s1653_s26, 3 }
  0xb4   : > { %vm376_vm3 = vcmask 15360   ;;  %s1672_s21 = smov (!%p1447_p0), 1   ;;  %s1673_s22 = smov (!%p1447_p0), 127  }
  0xb5   : > { %365 = vadd.xlane.f32.xlu0 %v364_v19  ;;  %v369_v22 = vadd.f32 %v368_v21, %v367_v20 }
  0xb9   : > { %v372_v24 = vld [vmem:[#allocation2] sm:$0xff] }
  0xbd   : > { %370 = vadd.xlane.f32.xlu0 %v369_v22 }
 0x128   : > { %v366_v23 = vpop.xlane.xlu0 %365 }
 0x130   : > { %v371_v25 = vpop.xlane.xlu0 %370  ;;  %381 = sbr.rel (%p1447_p0) target bundleno = 694 (0x2b6), region = 83 }
 0x131   : > { %v374_v26 = vsel %vm373_vm2, %v366_v23, %v371_v25 }
 0x132   : > { %v375_v27 = vadd.f32 %v374_v26, %v372_v24 }
 0x134   : > { %377 = vst.msk [vmem:[#allocation2] sm:$0xff] %vm376_vm3, %v375_v27 }
 0x135   : > { %vm413_vm7 = vcmask 15368  }
 0x13b   : > { %v382_v28 = vld [vmem:[#allocation2] sm:$0xff] }
 0x13c   : > { %v383_v29 = vmul.f32 0.0009765625, %v382_v28 }
 0x13e   : > { %v384_v30 = vmul.f32 %v383_v29, %v383_v29 }
 0x140   : > { %386 = vrot.lane.b32.xlu0 %v384_v30, %s1672_s21 }
 0x1b2   : > { %v387_v31 = vpop.permute.xlu0 %386 }
 0x1b3   : > { %v389_v32 = vsub.f32 %v383_v29, %v387_v31 }
 0x1b5   : > { %v390_v33 = vadd.f32 1e-05, %v389_v32 }
 0x1b7   : > { %1591 = vrsqrt.f32 %v390_v33  ;;  %vm397_vm5 = vweird.f32 %v390_v33 }
 0x1bd   : > { %v1592_v34 = vpop.eup %1591 }
 0x1be   : > { %v392_v35 = vmul.f32 %v1592_v34, %v390_v33  ;;  %vm398_vm4 = vweird.f32 %v1592_v34 }
 0x1bf   : > { %vm399_vm6 = vmor %vm397_vm5, %vm398_vm4 }
 0x1c0   : > { %v393_v36 = vmul.f32 %v1592_v34, %v392_v35 }
 0x1c2   : > { %v394_v37 = vmul.f32 0.5, %v393_v36 }
 0x1c4   : > { %v395_v38 = vsub.f32 1.5, %v394_v37 }
 0x1c6   : > { %v396_v39 = vmul.f32 %v1592_v34, %v395_v38 }
 0x1c8   : > { %v400_v40 = vsel %vm399_vm6, %v1592_v34, %v396_v39 }
 0x1c9   : > { %402 = vrot.lane.b32.xlu0 %v400_v40, %s1673_s22 }
 0x23b   : > { %v403_v41 = vpop.permute.xlu0 %402 }
 0x23c   : > { %v405_v42 = vmul.f32 %v403_v41, %v1826_v4 }
 0x23e   : > { %412 = vst.msk [vmem:[#allocation4] sm:$0xff] %vm373_vm2, %v405_v42  ;;  %v406_v43 = vmul.f32 %v405_v42, %v383_v29 }
 0x240   : > { %408 = vrot.lane.b32.xlu1 %v406_v43, %s1672_s21 }
 0x2b2   : > { %v409_v44 = vpop.permute.xlu1 %408 }
 0x2b3   : > { %v411_v45 = vsub.f32 %v1826_v4, %v409_v44 }
 0x2b5   : > { %414 = vst.msk [vmem:[#allocation4] sm:$0xff] %vm413_vm7, %v411_v45 }
 0x2b6 PF: > { %v1674_v46 = vmov 0.0  }
 0x2b7   : > { %415 = vst [vmem:[%s1854_s24] sm:$0xff] %v1674_v46 }
 0x2b8   : > { %416 = vst [vmem:[%s1854_s24 + $0x8] sm:$0xff] %v1674_v46 }
 0x2b9   : > { %417 = vst [vmem:[%s1854_s24 + $0x10] sm:$0xff] %v1674_v46 }
 0x2ba   : > { %418 = vst [vmem:[%s1854_s24 + $0x18] sm:$0xff] %v1674_v46 }
 0x2bb PF: > { %p1448_p1 = scmp.ne.s32.totalorder %s1657_s27, 1 }
 0x2bc   : > { %s1677_s11 = smov (!%p1448_p1), 127   ;;  %s1678_s12 = smov (!%p1448_p1), 113  }
 0x2bd   : > { %422 = sbr.rel (%p1448_p1) target bundleno = 1782 (0x6f6), region = 87  ;;  %s1679_s15 = smov (!%p1448_p1), 111  }
 0x2be   : > { %s1680_s16 = smov (!%p1448_p1), 15   ;;  %s1681_s17 = smov (!%p1448_p1), 17  }
 0x2bf   : > { %s1682_s18 = smov (!%p1448_p1), 112   ;;  %s1683_s19 = smov (!%p1448_p1), 16  }
 0x2c0   : > { %s1684_s20 = smov (!%p1448_p1), 1   ;;  %p1453_p2 = scmp.ne.s32.totalorder (!%p1448_p1), %s1653_s26, 0 }
 0x2c2   : > { %435 = vmatpush.bf16.msra.mxu0 %v1848_v11  ;;  %448 = vmatpush.bf16.msra.mxu1 %v1852_v12  ;;  %v423_v47 = vld [vmem:[%s2256_s1] sm:$0xf]  ;;  %vm424_vm8 = vcmask 130048   ;;  %v454_v48 = vld [vmem:[#allocation4] sm:$0xff]  ;;  %v1675_v49 = vmov 0   ;;  %v1676_v50 = vmov 1   ;;  %v474_v1 = vlaneseq }
 0x2c3   : > { %1593 = vset.pattern.permute.xlu0 %v1675_v49  ;;  %v544_v14 = vld [vmem:[%s2261_s6 + $0x80] sm:$0xff]  ;;  %v545_v15 = vld [vmem:[%s2261_s6 + $0x88] sm:$0xff]  ;;  %vm579_vm10 = vcmask 1043456   ;;  %v542_v30 = vld [vmem:[%s2261_s6 + $0x70] sm:$0xff]  ;;  %vm575_vm2 = vcmask 588800  }
 0x2c4   : > { %457 = vperm.xlu0 %1593, %v454_v48   ;;  %v1898_v3 = vand.u32 127, %v474_v1  ;;  %v540_v24 = vld [vmem:[%s2261_s6 + $0x60] sm:$0xff]  ;;  %v541_v27 = vld [vmem:[%s2261_s6 + $0x68] sm:$0xff]  ;;  %v543_v31 = vld [vmem:[%s2261_s6 + $0x78] sm:$0xff] }
 0x2c5   : > { %1449 = vmatmul.msk.bf16.vlgmr.msra.gmra.mxu0 %vm424_vm8, %v423_v47  ;;  %1450 = vmatmul.msk.bf16.vlgmr.msra.gmra.mxu1 %vm424_vm8, %v423_v47  ;;  %v536_v43 = vld [vmem:[%s2261_s6 + $0x40] sm:$0xff]  ;;  %v538_v44 = vld [vmem:[%s2261_s6 + $0x50] sm:$0xff]  ;;  %v539_v45 = vld [vmem:[%s2261_s6 + $0x58] sm:$0xff] }
 0x2c6   : > { %vm525_vm9 = vcmp.lt.s32.totalorder %v1898_v3, 111  ;;  %vm511_vm11 = vcmp.lt.s32.totalorder %v1898_v3, 113  ;;  %vm518_vm12 = vcmp.lt.s32.totalorder %v1898_v3, 112  ;;  %vm504_vm13 = vcmp.lt.s32.totalorder %v1898_v3, 127  ;;  %v537_v46 = vld [vmem:[%s2261_s6 + $0x48] sm:$0xff] }
 0x2c7   : > { %vm490_vm14 = vcmp.lt.s32.totalorder %v1898_v3, 15  ;;  %vm497_vm15 = vcmp.lt.s32.totalorder %v1898_v3, 1  ;;  %vm483_vm0 = vcmp.lt.s32.totalorder %v1898_v3, 16  ;;  %vm476_vm1 = vcmp.lt.s32.totalorder %v1898_v3, 17 }
 0x2cc   : > { %1594 = vset.pattern.permute.xlu0 %v1676_v50 }
 0x2cd   : > { %463 = vperm.xlu0 %1594, %v454_v48  }
 0x336   : > { %v458_v51 = vpop.permute.xlu0 %457 }
 0x33f   : > { %v464_v52 = vpop.permute.xlu0 %463 }
 0x342   : > { %v437_v53 = vpop.f32.mrf.mxu0  ;;  %v450_v54 = vpop.f32.mrf.mxu1 }
 0x343   : > { %v460_v55 = vmul.f32 %v458_v51, %v437_v53  ;;  %v461_v57 = vmul.f32 %v458_v51, %v450_v54 }
 0x345   : > { %v466_v56 = vadd.f32 %v464_v52, %v460_v55  ;;  %v467_v61 = vadd.f32 %v464_v52, %v461_v57 }
 0x347   : > { %v1878_v58 = vmax.f32 %v466_v56, 0.0  ;;  %v1883_v62 = vmax.f32 %v467_v61, 0.0 }
 0x349   : > { %500 = vrot.lane.b32.xlu0 %v1878_v58, %s1677_s11  ;;  %507 = vrot.lane.b32.xlu2 %v1878_v58, %s1678_s12  ;;  %v554_v53 = vmul.f32 %v536_v43, %v1878_v58  ;;  %v555_v54 = vmul.f32 %v537_v46, %v1883_v62 }
 0x34a   : > { %521 = vrot.lane.b32.xlu1 %v1878_v58, %s1679_s15  ;;  %v439_v59 = vpop.f32.mrf.mxu0  ;;  %v452_v60 = vpop.f32.mrf.mxu1 }
 0x34b   : > { %v532_v59 = vld [vmem:[%s2261_s6 + $0x20] sm:$0xff]  ;;  %v533_v60 = vld [vmem:[%s2261_s6 + $0x28] sm:$0xff] }
 0x351   : > { %488 = vrot.lane.b32.xlu0 %v1883_v62, %s1680_s16  ;;  %509 = vrot.lane.b32.xlu2 %v1883_v62, %s1678_s12 }
 0x352   : > { %523 = vrot.lane.b32.xlu1 %v1883_v62, %s1679_s15 }
 0x359   : > { %470 = vrot.lane.b32.xlu0 %v1878_v58, %s1681_s17  ;;  %516 = vrot.lane.b32.xlu2 %v1883_v62, %s1682_s18 }
 0x35a   : > { %514 = vrot.lane.b32.xlu1 %v1878_v58, %s1682_s18 }
 0x361   : > { %481 = vrot.lane.b32.xlu0 %v1883_v62, %s1683_s19  ;;  %486 = vrot.lane.b32.xlu2 %v1878_v58, %s1680_s16 }
 0x362   : > { %502 = vrot.lane.b32.xlu1 %v1883_v62, %s1677_s11 }
 0x369   : > { %495 = vrot.lane.b32.xlu2 %v1883_v62, %s1684_s20 }
 0x36a   : > { %493 = vrot.lane.b32.xlu1 %v1878_v58, %s1684_s20 }
 0x371   : > { %479 = vrot.lane.b32.xlu2 %v1878_v58, %s1683_s19 }
 0x372   : > { %472 = vrot.lane.b32.xlu1 %v1883_v62, %s1681_s17  ;;  %v534_v62 = vld [vmem:[%s2261_s6 + $0x30] sm:$0xff] }
 0x3a3   : > { %v508_v63 = vpop.permute.xlu2 %507 }
 0x3ab   : > { %v510_v0 = vpop.permute.xlu2 %509 }
 0x3ac   : > { %v512_v28 = vsel %vm511_vm11, %v508_v63, %v510_v0  ;;  %v513_v29 = vsel %vm511_vm11, %v510_v0, %v508_v63  ;;  %v535_v63 = vld [vmem:[%s2261_s6 + $0x38] sm:$0xff] }
 0x3ad   : > { %v558_v36 = vmul.f32 %v540_v24, %v512_v28  ;;  %v559_v37 = vmul.f32 %v541_v27, %v513_v29 }
 0x3b3   : > { %v517_v16 = vpop.permute.xlu2 %516 }
 0x3bb   : > { %v501_v13 = vpop.permute.xlu0 %500  ;;  %v487_v38 = vpop.permute.xlu2 %486 }
 0x3bc   : > { %v522_v2 = vpop.permute.xlu1 %521 }
 0x3c3   : > { %v489_v32 = vpop.permute.xlu0 %488  ;;  %v496_v55 = vpop.permute.xlu2 %495 }
 0x3c4   : > { %v524_v17 = vpop.permute.xlu1 %523  ;;  %v491_v58 = vsel %vm490_vm14, %v487_v38, %v489_v32  ;;  %v492_v61 = vsel %vm490_vm14, %v489_v32, %v487_v38 }
 0x3c5   : > { %v526_v18 = vsel %vm525_vm9, %v522_v2, %v524_v17  ;;  %v527_v19 = vsel %vm525_vm9, %v524_v17, %v522_v2 }
 0x3c6   : > { %v562_v20 = vmul.f32 %v544_v14, %v526_v18  ;;  %v563_v21 = vmul.f32 %v545_v15, %v527_v19  ;;  %v551_v14 = vmul.f32 %v533_v60, %v491_v58 }
 0x3c8   : > { %v573_v22 = vpack.c.bf16 %v562_v20, %v562_v20  ;;  %v574_v23 = vpack.c.bf16 %v563_v21, %v563_v21  ;;  %v530_v21 = vld [vmem:[%s2261_s6 + $0x10] sm:$0xff] }
 0x3ca   : > { %v581_v25 = vsel %vm579_vm10, %v573_v22, 0  ;;  %v584_v26 = vsel %vm579_vm10, %v574_v23, 0  ;;  %v531_v22 = vld [vmem:[%s2261_s6 + $0x18] sm:$0xff] }
 0x3cb   : > { %589 = vmatpush.bf16.msra.mxu2 %v581_v25  ;;  %602 = vmatpush.bf16.msra.mxu3 %v584_v26  ;;  %v471_v50 = vpop.permute.xlu0 %470  ;;  %v480_v20 = vpop.permute.xlu2 %479  ;;  %v528_v25 = vld [vmem:[%s2261_s6] sm:$0xff]  ;;  %v529_v26 = vld [vmem:[%s2261_s6 + $0x8] sm:$0xff] }
 0x3cc   : > { %v515_v33 = vpop.permute.xlu1 %514 }
 0x3cd   : > { %v519_v34 = vsel %vm518_vm12, %v515_v33, %v517_v16  ;;  %v520_v35 = vsel %vm518_vm12, %v517_v16, %v515_v33 }
 0x3ce   : > { %v560_v39 = vmul.f32 %v542_v30, %v519_v34  ;;  %v561_v40 = vmul.f32 %v543_v31, %v520_v35  ;;  %v564_v35 = vld [vmem:[%s2257_s2] sm:$0xf] }
 0x3d0   : > { %v571_v41 = vpack.c.bf16 %v560_v39, %v558_v36  ;;  %v572_v42 = vpack.c.bf16 %v561_v40, %v559_v37 }
 0x3d2   : > { %590 = vmatpush.bf16.msra.mxu2 %v571_v41  ;;  %603 = vmatpush.bf16.msra.mxu3 %v572_v42 }
 0x3d3   : > { %v482_v17 = vpop.permute.xlu0 %481 }
 0x3d4   : > { %v503_v47 = vpop.permute.xlu1 %502  ;;  %v484_v23 = vsel %vm483_vm0, %v480_v20, %v482_v17  ;;  %v485_v24 = vsel %vm483_vm0, %v482_v17, %v480_v20 }
 0x3d5   : > { %v505_v48 = vsel %vm504_vm13, %v501_v13, %v503_v47  ;;  %v506_v49 = vsel %vm504_vm13, %v503_v47, %v501_v13  ;;  %v550_v13 = vmul.f32 %v532_v59, %v492_v61  ;;  %v548_v30 = vmul.f32 %v530_v21, %v485_v24 }
 0x3d6   : > { %v556_v51 = vmul.f32 %v538_v44, %v505_v48  ;;  %v557_v52 = vmul.f32 %v539_v45, %v506_v49  ;;  %v549_v31 = vmul.f32 %v531_v22, %v484_v23 }
 0x3d8   : > { %v569_v56 = vpack.c.bf16 %v556_v51, %v554_v53  ;;  %v570_v57 = vpack.c.bf16 %v557_v52, %v555_v54 }
 0x3da   : > { %591 = vmatpush.bf16.msra.mxu2 %v569_v56  ;;  %604 = vmatpush.bf16.msra.mxu3 %v570_v57 }
 0x3dc   : > { %v494_v0 = vpop.permute.xlu1 %493 }
 0x3dd   : > { %v498_v1 = vsel %vm497_vm15, %v494_v0, %v496_v55  ;;  %v499_v2 = vsel %vm497_vm15, %v496_v55, %v494_v0 }
 0x3de   : > { %v552_v15 = vmul.f32 %v534_v62, %v499_v2  ;;  %v553_v16 = vmul.f32 %v535_v63, %v498_v1 }
 0x3e0   : > { %v567_v18 = vpack.c.bf16 %v552_v15, %v550_v13  ;;  %v568_v19 = vpack.c.bf16 %v553_v16, %v551_v14 }
 0x3e2   : > { %592 = vmatpush.bf16.msra.mxu2 %v567_v18  ;;  %605 = vmatpush.bf16.msra.mxu3 %v568_v19 }
 0x3e4   : > { %v473_v27 = vpop.permute.xlu1 %472 }
 0x3e5   : > { %v477_v28 = vsel %vm476_vm1, %v471_v50, %v473_v27  ;;  %v478_v29 = vsel %vm476_vm1, %v473_v27, %v471_v50 }
 0x3e6   : > { %v546_v3 = vmul.f32 %v528_v25, %v478_v29  ;;  %v547_v32 = vmul.f32 %v529_v26, %v477_v28 }
 0x3e8   : > { %v565_v33 = vpack.c.bf16 %v548_v30, %v546_v3  ;;  %v566_v34 = vpack.c.bf16 %v549_v31, %v547_v32 }
 0x3ea   : > { %593 = vmatpush.bf16.msra.mxu2 %v565_v33  ;;  %606 = vmatpush.bf16.msra.mxu3 %v566_v34 }
 0x3ed   : > { %1451 = vmatmul.msk.bf16.vlgmr.msra.gmra.mxu2 %vm575_vm2, %v564_v35  ;;  %1452 = vmatmul.msk.bf16.vlgmr.msra.gmra.mxu3 %vm575_vm2, %v564_v35 }
 0x470   : > { %v595_v36 = vpop.f32.mrf.mxu2  ;;  %v608_v37 = vpop.f32.mrf.mxu3 }
 0x474   : > { %615 = sbr.rel (%p1453_p2) target bundleno = 1147 (0x47b), region = 91 }
 0x478   : > { %v597_v38 = vpop.f32.mrf.mxu2  ;;  %v610_v39 = vpop.f32.mrf.mxu3 }
 0x479   : > { %vm616_vm3 = vcmask 15360   ;;  %v1685_v40 = vmov 0.0  }
 0x47a   : > { %617 = vst.msk [vmem:[#allocation2] sm:$0xff] %vm616_vm3, %v1685_v40 }
 0x47b PF: > { %v618_v41 = vadd.f32 %v608_v37, %v595_v36  ;;  %v621_v42 = vmul.f32 %v595_v36, %v595_v36  ;;  %v622_v43 = vmul.f32 %v608_v37, %v608_v37  ;;  %vm627_vm4 = vcmask 7168   ;;  %p1454_p3 = scmp.ne.s32.totalorder %s1653_s26, 3 }
 0x47c   : > { %vm630_vm5 = vcmask 15360   ;;  %s1686_s23 = smov (!%p1454_p3), 1   ;;  %s1687_s8 = smov (!%p1454_p3), 126  }
 0x47d   : > { %619 = vadd.xlane.f32.xlu0 %v618_v41  ;;  %v623_v44 = vadd.f32 %v622_v43, %v621_v42  ;;  %s1688_s11 = smov (!%p1454_p3), 3  }
 0x481   : > { %v626_v46 = vld [vmem:[#allocation2] sm:$0xff] }
 0x485   : > { %624 = vadd.xlane.f32.xlu0 %v623_v44 }
 0x4f0   : > { %v620_v45 = vpop.xlane.xlu0 %619 }
 0x4f8   : > { %v625_v47 = vpop.xlane.xlu0 %624  ;;  %635 = sbr.rel (%p1454_p3) target bundleno = 1777 (0x6f1), region = 95 }
 0x4f9   : > { %v628_v48 = vsel %vm627_vm4, %v620_v45, %v625_v47 }
 0x4fa   : > { %v629_v49 = vadd.f32 %v628_v48, %v626_v46 }
 0x4fc   : > { %631 = vst.msk [vmem:[#allocation2] sm:$0xff] %vm630_vm5, %v629_v49 }
 0x4fd   : > { %vm670_vm9 = vcmask 23568   ;;  %vm672_vm10 = vcmask 31768  }
 0x503   : > { %v636_v50 = vld [vmem:[#allocation2] sm:$0xff] }
 0x504   : > { %v637_v51 = vmul.f32 0.0009765625, %v636_v50 }
 0x506   : > { %v638_v52 = vmul.f32 %v637_v51, %v637_v51 }
 0x508   : > { %640 = vrot.lane.b32.xlu0 %v638_v52, %s1686_s23 }
 0x57a   : > { %v641_v53 = vpop.permute.xlu0 %640 }
 0x57b   : > { %v643_v54 = vsub.f32 %v637_v51, %v641_v53 }
 0x57d   : > { %v644_v55 = vadd.f32 1e-05, %v643_v54 }
 0x57f   : > { %1595 = vrsqrt.f32 %v644_v55  ;;  %vm651_vm7 = vweird.f32 %v644_v55 }
 0x585   : > { %v1596_v56 = vpop.eup %1595 }
 0x586   : > { %v646_v57 = vmul.f32 %v1596_v56, %v644_v55  ;;  %vm652_vm6 = vweird.f32 %v1596_v56 }
 0x587   : > { %vm653_vm8 = vmor %vm651_vm7, %vm652_vm6 }
 0x588   : > { %v647_v59 = vmul.f32 %v1596_v56, %v646_v57 }
 0x58a   : > { %v648_v60 = vmul.f32 0.5, %v647_v59 }
 0x58c   : > { %v649_v58 = vsub.f32 1.5, %v648_v60 }
 0x58e   : > { %v650_v61 = vmul.f32 %v1596_v56, %v649_v58 }
 0x590   : > { %v654_v62 = vsel %vm653_vm8, %v1596_v56, %v650_v61 }
 0x591   : > { %656 = vrot.lane.b32.xlu0 %v654_v62, %s1686_s23 }
 0x603   : > { %v657_v63 = vpop.permute.xlu0 %656 }
 0x604   : > { %v659_v0 = vmul.f32 %v657_v63, %v1826_v4 }
 0x606   : > { %671 = vst.msk [vmem:[#allocation4] sm:$0xff] %vm670_vm9, %v659_v0  ;;  %661 = vrot.lane.b32.xlu1 %v659_v0, %s1687_s8 }
 0x678   : > { %v662_v1 = vpop.permute.xlu1 %661 }
 0x679   : > { %v664_v2 = vmul.f32 %v662_v1, %v637_v51 }
 0x67b   : > { %666 = vrot.lane.b32.xlu1 %v664_v2, %s1688_s11 }
 0x6ed   : > { %v667_v13 = vpop.permute.xlu1 %666 }
 0x6ee   : > { %v669_v14 = vsub.f32 %v1826_v4, %v667_v13 }
 0x6f0   : > { %673 = vst.msk [vmem:[#allocation4] sm:$0xff] %vm672_vm10, %v669_v14 }
 0x6f1 PF: > { %v1689_v15 = vmov 0.0  }
 0x6f2   : > { %674 = vst [vmem:[%s1854_s24] sm:$0xff] %v1689_v15 }
 0x6f3   : > { %675 = vst [vmem:[%s1854_s24 + $0x8] sm:$0xff] %v1689_v15 }
 0x6f4   : > { %676 = vst [vmem:[%s1854_s24 + $0x10] sm:$0xff] %v1689_v15 }
 0x6f5   : > { %677 = vst [vmem:[%s1854_s24 + $0x18] sm:$0xff] %v1689_v15 }
 0x6f6 PF: > { %p1455_p4 = scmp.ne.s32.totalorder %s1657_s27, 2 }
 0x6f7   : > { %s1692_s16 = smov (!%p1455_p4), 127   ;;  %s1693_s17 = smov (!%p1455_p4), 113  }
 0x6f8   : > { %681 = sbr.rel (%p1455_p4) target bundleno = 2869 (0xb35), region = 99  ;;  %s1694_s18 = smov (!%p1455_p4), 111  }
 0x6f9   : > { %s1695_s19 = smov (!%p1455_p4), 15   ;;  %s1696_s20 = smov (!%p1455_p4), 17  }
 0x6fa   : > { %s1697_s21 = smov (!%p1455_p4), 112   ;;  %s1698_s22 = smov (!%p1455_p4), 16  }
 0x6fb   : > { %s1699_s23 = smov (!%p1455_p4), 1   ;;  %p1466_p5 = scmp.ne.s32.totalorder (!%p1455_p4), %s1653_s26, 0 }
 0x6fd   : > { %694 = vmatpush.bf16.msra.mxu0 %v1848_v11  ;;  %707 = vmatpush.bf16.msra.mxu1 %v1852_v12  ;;  %v682_v4 = vld [vmem:[%s2256_s1] sm:$0xf]  ;;  %vm683_vm11 = vcmask 130048   ;;  %v1981_v16 = vld [vmem:[#allocation4] sm:$0xff]  ;;  %v1690_v17 = vmov 0   ;;  %v1691_v18 = vmov 1   ;;  %v733_v32 = vlaneseq }
 0x6fe   : > { %1597 = vset.pattern.permute.xlu0 %v1690_v17  ;;  %v803_v36 = vld [vmem:[%s2261_s6 + $0x80] sm:$0xff]  ;;  %v804_v37 = vld [vmem:[%s2261_s6 + $0x88] sm:$0xff]  ;;  %vm838_vm14 = vcmask 1043456   ;;  %v801_v52 = vld [vmem:[%s2261_s6 + $0x70] sm:$0xff]  ;;  %v1700_v63 = vmov 2   ;;  %v1701_v0 = vmov 3  }
 0x6ff   : > { %716 = vperm.xlu0 %1597, %v1981_v16   ;;  %v2005_v34 = vand.u32 127, %v733_v32  ;;  %v799_v46 = vld [vmem:[%s2261_s6 + $0x60] sm:$0xff]  ;;  %v800_v50 = vld [vmem:[%s2261_s6 + $0x68] sm:$0xff]  ;;  %v802_v53 = vld [vmem:[%s2261_s6 + $0x78] sm:$0xff]  ;;  %1599 = vset.pattern.permute.xlu1 %v1700_v63  ;;  %vm834_vm5 = vcmask 588800   ;;  %vm894_vm6 = vcmask 64512  }
 0x700   : > { %1456 = vmatmul.msk.bf16.vlgmr.msra.gmra.mxu0 %vm683_vm11, %v682_v4  ;;  %1457 = vmatmul.msk.bf16.vlgmr.msra.gmra.mxu1 %vm683_vm11, %v682_v4  ;;  %v795_v13 = vld [vmem:[%s2261_s6 + $0x40] sm:$0xff]  ;;  %v797_v14 = vld [vmem:[%s2261_s6 + $0x50] sm:$0xff]  ;;  %v798_v15 = vld [vmem:[%s2261_s6 + $0x58] sm:$0xff] }
 0x701   : > { %vm784_vm12 = vcmp.lt.s32.totalorder %v2005_v34, 111  ;;  %vm770_vm13 = vcmp.lt.s32.totalorder %v2005_v34, 113  ;;  %vm777_vm15 = vcmp.lt.s32.totalorder %v2005_v34, 112  ;;  %1600 = vset.pattern.permute.xlu2 %v1701_v0  ;;  %vm763_vm0 = vcmp.lt.s32.totalorder %v2005_v34, 127  ;;  %v796_v4 = vld [vmem:[%s2261_s6 + $0x48] sm:$0xff] }
 0x702   : > { %vm749_vm1 = vcmp.lt.s32.totalorder %v2005_v34, 15  ;;  %vm756_vm2 = vcmp.lt.s32.totalorder %v2005_v34, 1  ;;  %vm742_vm3 = vcmp.lt.s32.totalorder %v2005_v34, 16  ;;  %vm735_vm4 = vcmp.lt.s32.totalorder %v2005_v34, 17 }
 0x707   : > { %1598 = vset.pattern.permute.xlu0 %v1691_v18 }
 0x708   : > { %722 = vperm.xlu0 %1598, %v1981_v16  }
 0x710   : > { %1601 = vset.pattern.permute.xlu0 %v1701_v0 }
 0x771   : > { %v717_v19 = vpop.permute.xlu0 %716 }
 0x77a   : > { %v723_v20 = vpop.permute.xlu0 %722 }
 0x77d   : > { %v696_v21 = vpop.f32.mrf.mxu0  ;;  %v709_v22 = vpop.f32.mrf.mxu1 }
 0x77e   : > { %v719_v23 = vmul.f32 %v717_v19, %v696_v21  ;;  %v720_v25 = vmul.f32 %v717_v19, %v709_v22 }
 0x780   : > { %v725_v24 = vadd.f32 %v723_v20, %v719_v23  ;;  %v726_v29 = vadd.f32 %v723_v20, %v720_v25 }
 0x782   : > { %v1985_v26 = vmax.f32 %v725_v24, 0.0  ;;  %v1990_v30 = vmax.f32 %v726_v29, 0.0  ;;  %v792_v29 = vld [vmem:[%s2261_s6 + $0x28] sm:$0xff] }
 0x784   : > { %759 = vrot.lane.b32.xlu0 %v1985_v26, %s1692_s16  ;;  %766 = vrot.lane.b32.xlu2 %v1985_v26, %s1693_s17  ;;  %v813_v22 = vmul.f32 %v795_v13, %v1985_v26  ;;  %v814_v23 = vmul.f32 %v796_v4, %v1990_v30 }
 0x785   : > { %780 = vrot.lane.b32.xlu1 %v1985_v26, %s1694_s18  ;;  %v698_v27 = vpop.f32.mrf.mxu0  ;;  %v711_v28 = vpop.f32.mrf.mxu1 }
 0x786   : > { %v791_v28 = vld [vmem:[%s2261_s6 + $0x20] sm:$0xff] }
 0x78c   : > { %747 = vrot.lane.b32.xlu0 %v1990_v30, %s1695_s19  ;;  %768 = vrot.lane.b32.xlu2 %v1990_v30, %s1693_s17 }
 0x78d   : > { %782 = vrot.lane.b32.xlu1 %v1990_v30, %s1694_s18 }
 0x794   : > { %729 = vrot.lane.b32.xlu0 %v1985_v26, %s1696_s20  ;;  %775 = vrot.lane.b32.xlu2 %v1990_v30, %s1697_s21 }
 0x795   : > { %773 = vrot.lane.b32.xlu1 %v1985_v26, %s1697_s21 }
 0x79c   : > { %740 = vrot.lane.b32.xlu0 %v1990_v30, %s1698_s22  ;;  %745 = vrot.lane.b32.xlu2 %v1985_v26, %s1695_s19 }
 0x79d   : > { %761 = vrot.lane.b32.xlu1 %v1990_v30, %s1692_s16 }
 0x7a4   : > { %754 = vrot.lane.b32.xlu2 %v1990_v30, %s1699_s23 }
 0x7a5   : > { %752 = vrot.lane.b32.xlu1 %v1985_v26, %s1699_s23 }
 0x7ac   : > { %738 = vrot.lane.b32.xlu2 %v1985_v26, %s1698_s22 }
 0x7ad   : > { %731 = vrot.lane.b32.xlu1 %v1990_v30, %s1696_s20  ;;  %v793_v30 = vld [vmem:[%s2261_s6 + $0x30] sm:$0xff] }
 0x7b4   : > { %878 = vperm.xlu2 %1600, %v1981_v16  }
 0x7b5   : > { %872 = vperm.xlu1 %1599, %v1981_v16  }
 0x7de   : > { %v767_v31 = vpop.permute.xlu2 %766 }
 0x7e6   : > { %v769_v3 = vpop.permute.xlu2 %768 }
 0x7e7   : > { %v771_v47 = vsel %vm770_vm13, %v767_v31, %v769_v3  ;;  %v772_v51 = vsel %vm770_vm13, %v769_v3, %v767_v31  ;;  %v794_v3 = vld [vmem:[%s2261_s6 + $0x38] sm:$0xff] }
 0x7e8   : > { %v817_v54 = vmul.f32 %v799_v46, %v771_v47  ;;  %v818_v60 = vmul.f32 %v800_v50, %v772_v51 }
 0x7ee   : > { %v776_v38 = vpop.permute.xlu2 %775 }
 0x7f6   : > { %v760_v35 = vpop.permute.xlu0 %759  ;;  %v746_v58 = vpop.permute.xlu2 %745 }
 0x7f7   : > { %v781_v33 = vpop.permute.xlu1 %780 }
 0x7fe   : > { %v748_v55 = vpop.permute.xlu0 %747  ;;  %v755_v24 = vpop.permute.xlu2 %754 }
 0x7ff   : > { %v783_v39 = vpop.permute.xlu1 %782  ;;  %v750_v26 = vsel %vm749_vm1, %v746_v58, %v748_v55  ;;  %v751_v31 = vsel %vm749_vm1, %v748_v55, %v746_v58 }
 0x800   : > { %v785_v40 = vsel %vm784_vm12, %v781_v33, %v783_v39  ;;  %v786_v41 = vsel %vm784_vm12, %v783_v39, %v781_v33 }
 0x801   : > { %v821_v42 = vmul.f32 %v803_v36, %v785_v40  ;;  %v822_v43 = vmul.f32 %v804_v37, %v786_v41  ;;  %v809_v36 = vmul.f32 %v791_v28, %v751_v31  ;;  %v810_v37 = vmul.f32 %v792_v29, %v750_v26 }
 0x803   : > { %v832_v44 = vpack.c.bf16 %v821_v42, %v821_v42  ;;  %v833_v45 = vpack.c.bf16 %v822_v43, %v822_v43 }
 0x805   : > { %v840_v48 = vsel %vm838_vm14, %v832_v44, 0  ;;  %v843_v49 = vsel %vm838_vm14, %v833_v45, 0  ;;  %v789_v44 = vld [vmem:[%s2261_s6 + $0x10] sm:$0xff]  ;;  %v790_v45 = vld [vmem:[%s2261_s6 + $0x18] sm:$0xff] }
 0x806   : > { %848 = vmatpush.bf16.msra.mxu2 %v840_v48  ;;  %861 = vmatpush.bf16.msra.mxu3 %v843_v49  ;;  %v730_v19 = vpop.permute.xlu0 %729  ;;  %v739_v43 = vpop.permute.xlu2 %738  ;;  %v787_v48 = vld [vmem:[%s2261_s6] sm:$0xff]  ;;  %v788_v49 = vld [vmem:[%s2261_s6 + $0x8] sm:$0xff] }
 0x807   : > { %v774_v56 = vpop.permute.xlu1 %773 }
 0x808   : > { %v778_v57 = vsel %vm777_vm15, %v774_v56, %v776_v38  ;;  %v779_v59 = vsel %vm777_vm15, %v776_v38, %v774_v56 }
 0x809   : > { %v819_v61 = vmul.f32 %v801_v52, %v778_v57  ;;  %v820_v62 = vmul.f32 %v802_v53, %v779_v59  ;;  %v823_v59 = vld [vmem:[%s2257_s2] sm:$0xf] }
 0x80b   : > { %v830_v1 = vpack.c.bf16 %v819_v61, %v817_v54  ;;  %v831_v2 = vpack.c.bf16 %v820_v62, %v818_v60 }
 0x80d   : > { %849 = vmatpush.bf16.msra.mxu2 %v830_v1  ;;  %862 = vmatpush.bf16.msra.mxu3 %v831_v2 }
 0x80e   : > { %v741_v40 = vpop.permute.xlu0 %740  ;;  %v879_v58 = vpop.permute.xlu2 %878 }
 0x80f   : > { %v762_v16 = vpop.permute.xlu1 %761  ;;  %v743_v46 = vsel %vm742_vm3, %v739_v43, %v741_v40  ;;  %v744_v47 = vsel %vm742_vm3, %v741_v40, %v739_v43 }
 0x810   : > { %v764_v17 = vsel %vm763_vm0, %v760_v35, %v762_v16  ;;  %v765_v18 = vsel %vm763_vm0, %v762_v16, %v760_v35  ;;  %v807_v53 = vmul.f32 %v789_v44, %v744_v47  ;;  %v808_v54 = vmul.f32 %v790_v45, %v743_v46 }
 0x811   : > { %v815_v20 = vmul.f32 %v797_v14, %v764_v17  ;;  %v816_v21 = vmul.f32 %v798_v15, %v765_v18 }
 0x813   : > { %v828_v25 = vpack.c.bf16 %v815_v20, %v813_v22  ;;  %v829_v27 = vpack.c.bf16 %v816_v21, %v814_v23  ;;  %v1485_v20 = vld [vmem:[%s2258_s3] sm:$0xff] }
 0x815   : > { %850 = vmatpush.bf16.msra.mxu2 %v828_v25  ;;  %863 = vmatpush.bf16.msra.mxu3 %v829_v27 }
 0x817   : > { %v753_v32 = vpop.permute.xlu1 %752 }
 0x818   : > { %v757_v33 = vsel %vm756_vm2, %v753_v32, %v755_v24  ;;  %v758_v35 = vsel %vm756_vm2, %v755_v24, %v753_v32 }
 0x819   : > { %v811_v38 = vmul.f32 %v793_v30, %v758_v35  ;;  %v812_v39 = vmul.f32 %v794_v3, %v757_v33 }
 0x81b   : > { %v826_v41 = vpack.c.bf16 %v811_v38, %v809_v36  ;;  %v827_v42 = vpack.c.bf16 %v812_v39, %v810_v37 }
 0x81d   : > { %851 = vmatpush.bf16.msra.mxu2 %v826_v41  ;;  %864 = vmatpush.bf16.msra.mxu3 %v827_v42 }
 0x81f   : > { %v732_v50 = vpop.permute.xlu1 %731 }
 0x820   : > { %v736_v51 = vsel %vm735_vm4, %v730_v19, %v732_v50  ;;  %v737_v52 = vsel %vm735_vm4, %v732_v50, %v730_v19 }
 0x821   : > { %v805_v34 = vmul.f32 %v787_v48, %v737_v52  ;;  %v806_v55 = vmul.f32 %v788_v49, %v736_v51 }
 0x823   : > { %v824_v56 = vpack.c.bf16 %v807_v53, %v805_v34  ;;  %v825_v57 = vpack.c.bf16 %v808_v54, %v806_v55 }
 0x825   : > { %852 = vmatpush.bf16.msra.mxu2 %v824_v56  ;;  %865 = vmatpush.bf16.msra.mxu3 %v825_v57 }
 0x827   : > { %v873_v60 = vpop.permute.xlu1 %872 }
 0x828   : > { %1458 = vmatmul.msk.bf16.vlgmr.msra.gmra.mxu2 %vm834_vm5, %v823_v59  ;;  %1459 = vmatmul.msk.bf16.vlgmr.msra.gmra.mxu3 %vm834_vm5, %v823_v59 }
 0x8ab   : > { %v867_v61 = vpop.f32.mrf.mxu3  ;;  %v854_v62 = vpop.f32.mrf.mxu2 }
 0x8ac   : > { %v876_v63 = vmul.f32 %v873_v60, %v867_v61  ;;  %v875_v0 = vmul.f32 %v873_v60, %v854_v62 }
 0x8ae   : > { %v881_v1 = vadd.f32 %v879_v58, %v875_v0  ;;  %v882_v2 = vadd.f32 %v879_v58, %v876_v63 }
 0x8b0   : > { %v883_v13 = vmax.f32 %v881_v1, 0.0  ;;  %v884_v14 = vmax.f32 %v882_v2, 0.0 }
 0x8b2   : > { %v887_v15 = vpack.c.bf16 %v883_v13, %v883_v13  ;;  %v888_v4 = vpack.c.bf16 %v884_v14, %v884_v14 }
 0x8b3   : > { %v856_v16 = vpop.f32.mrf.mxu2  ;;  %v869_v17 = vpop.f32.mrf.mxu3 }
 0x8b4   : > { %v899_v18 = vsel %vm838_vm14, %v887_v15, 0  ;;  %v902_v19 = vsel %vm838_vm14, %v888_v4, 0 }
 0x8b5   : > { %911 = vmatpush.bf16.msrb.mxu0 %v899_v18  ;;  %925 = vmatpush.bf16.msrb.mxu1 %v902_v19 }
 0x8b8   : > { %1464 = vmatmul.msk.bf16.vlgmr.msrb.gmra.mxu0 %vm894_vm6, %v1485_v20  ;;  %1465 = vmatmul.msk.bf16.vlgmr.msrb.gmra.mxu1 %vm894_vm6, %v1485_v20 }
 0x935   : > { %v913_v21 = vpop.f32.mrf.mxu0  ;;  %v927_v22 = vpop.f32.mrf.mxu1 }
 0x939   : > { %935 = sbr.rel (%p1466_p5) target bundleno = 2369 (0x941), region = 103 }
 0x93d   : > { %v915_v23 = vpop.f32.mrf.mxu0  ;;  %v929_v24 = vpop.f32.mrf.mxu1 }
 0x93e   : > { %vm936_vm7 = vcmask 15360   ;;  %v1702_v25 = vmov 0.0  }
 0x93f   : > { %937 = vst.msk [vmem:[#allocation3] sm:$0xff] %vm936_vm7, %v1702_v25 }
 0x940   : > { %938 = vst.msk [vmem:[#allocation3 + $0x8] sm:$0xff] %vm936_vm7, %v1702_v25 }
 0x941 PF: > { %v945_v27 = vmul.f32 %v913_v21, %v913_v21  ;;  %v946_v28 = vmul.f32 %v927_v22, %v927_v22  ;;  %v939_v29 = vadd.f32 %v927_v22, %v913_v21  ;;  %v947_v31 = vmul.f32 %v915_v23, %v915_v23  ;;  %p1467_p6 = scmp.ne.s32.totalorder %s1653_s26, 3 }
 0x942   : > { %v948_v30 = vmul.f32 %v929_v24, %v929_v24  ;;  %v942_v3 = vadd.f32 %v929_v24, %v915_v23  ;;  %vm957_vm8 = vcmask 7168   ;;  %vm962_vm9 = vcmask 15360   ;;  %s1703_s16 = smov (!%p1467_p6), 1   ;;  %s1704_s17 = smov (!%p1467_p6), 127  }
 0x943   : > { %v949_v26 = vadd.f32 %v946_v28, %v945_v27  ;;  %940 = vadd.xlane.f32.xlu0 %v939_v29 }
 0x944   : > { %v952_v32 = vadd.f32 %v948_v30, %v947_v31 }
 0x945   : > { %950 = vadd.xlane.f32.xlu1 %v949_v26 }
 0x946   : > { %v955_v35 = vld [vmem:[#allocation3] sm:$0xff] }
 0x947   : > { %v956_v40 = vld [vmem:[#allocation3 + $0x8] sm:$0xff] }
 0x94b   : > { %943 = vadd.xlane.f32.xlu0 %v942_v3 }
 0x94d   : > { %953 = vadd.xlane.f32.xlu1 %v952_v32 }
 0x9b6   : > { %v941_v33 = vpop.xlane.xlu0 %940 }
 0x9b8   : > { %v951_v36 = vpop.xlane.xlu1 %950 }
 0x9b9   : > { %v958_v37 = vsel %vm957_vm8, %v941_v33, %v951_v36 }
 0x9ba   : > { %v960_v38 = vadd.f32 %v958_v37, %v955_v35 }
 0x9bc   : > { %963 = vst.msk [vmem:[#allocation3] sm:$0xff] %vm962_vm9, %v960_v38 }
 0x9be   : > { %v944_v39 = vpop.xlane.xlu0 %943 }
 0x9c0   : > { %v954_v41 = vpop.xlane.xlu1 %953  ;;  %968 = sbr.rel (%p1467_p6) target bundleno = 2864 (0xb30), region = 107 }
 0x9c1   : > { %v959_v42 = vsel %vm957_vm8, %v944_v39, %v954_v41 }
 0x9c2   : > { %v961_v43 = vadd.f32 %v959_v42, %v956_v40 }
 0x9c4   : > { %964 = vst.msk [vmem:[#allocation3 + $0x8] sm:$0xff] %vm962_vm9, %v961_v43 }
 0x9c5   : > { %v969_v44 = vld [vmem:[#allocation3] sm:$0xff]  ;;  %vm1031_vm0 = vcmask 15368  }
 0x9c6   : > { %v971_v45 = vmul.f32 0.0009765625, %v969_v44 }
 0x9c8   : > { %v973_v47 = vmul.f32 %v971_v45, %v971_v45 }
 0x9ca   : > { %977 = vrot.lane.b32.xlu0 %v973_v47, %s1703_s16 }
 0x9cb   : > { %v970_v46 = vld [vmem:[#allocation3 + $0x8] sm:$0xff] }
 0x9cc   : > { %v972_v48 = vmul.f32 0.0009765625, %v970_v46 }
 0x9ce   : > { %v974_v49 = vmul.f32 %v972_v48, %v972_v48 }
 0x9d2   : > { %979 = vrot.lane.b32.xlu0 %v974_v49, %s1703_s16 }
 0xa3c   : > { %v978_v50 = vpop.permute.xlu0 %977 }
 0xa3d   : > { %v983_v51 = vsub.f32 %v971_v45, %v978_v50 }
 0xa3f   : > { %v985_v52 = vadd.f32 1e-05, %v983_v51 }
 0xa41   : > { %1602 = vrsqrt.f32 %v985_v52  ;;  %vm993_vm11 = vweird.f32 %v985_v52 }
 0xa44   : > { %v980_v53 = vpop.permute.xlu0 %979 }
 0xa45   : > { %v984_v54 = vsub.f32 %v972_v48, %v980_v53 }
 0xa47   : > { %v1603_v34 = vpop.eup %1602  ;;  %v986_v55 = vadd.f32 1e-05, %v984_v54 }
 0xa48   : > { %v988_v56 = vmul.f32 %v1603_v34, %v985_v52  ;;  %vm994_vm10 = vweird.f32 %v1603_v34 }
 0xa49   : > { %1604 = vrsqrt.f32 %v986_v55  ;;  %vm995_vm12 = vmor %vm993_vm11, %vm994_vm10  ;;  %vm1003_vm14 = vweird.f32 %v986_v55 }
 0xa4a   : > { %v989_v57 = vmul.f32 %v1603_v34, %v988_v56 }
 0xa4c   : > { %v990_v59 = vmul.f32 0.5, %v989_v57 }
 0xa4e   : > { %v991_v60 = vsub.f32 1.5, %v990_v59 }
 0xa4f   : > { %v1605_v58 = vpop.eup %1604 }
 0xa50   : > { %v998_v61 = vmul.f32 %v1605_v58, %v986_v55  ;;  %v992_v62 = vmul.f32 %v1603_v34, %v991_v60  ;;  %vm1004_vm13 = vweird.f32 %v1605_v58 }
 0xa51   : > { %vm1005_vm15 = vmor %vm1003_vm14, %vm1004_vm13 }
 0xa52   : > { %v999_v63 = vmul.f32 %v1605_v58, %v998_v61  ;;  %v996_v0 = vsel %vm995_vm12, %v1603_v34, %v992_v62 }
 0xa53   : > { %1009 = vrot.lane.b32.xlu1 %v996_v0, %s1704_s17 }
 0xa54   : > { %v1000_v1 = vmul.f32 0.5, %v999_v63 }
 0xa56   : > { %v1001_v2 = vsub.f32 1.5, %v1000_v1 }
 0xa58   : > { %v1002_v13 = vmul.f32 %v1605_v58, %v1001_v2 }
 0xa5a   : > { %v1006_v14 = vsel %vm1005_vm15, %v1605_v58, %v1002_v13 }
 0xa5b   : > { %1011 = vrot.lane.b32.xlu1 %v1006_v14, %s1704_s17 }
 0xac5   : > { %v1010_v15 = vpop.permute.xlu1 %1009 }
 0xac6   : > { %v1015_v4 = vmul.f32 %v1010_v15, %v1831_v5 }
 0xac8   : > { %1029 = vst.msk [vmem:[#allocation5] sm:$0xff] %vm957_vm8, %v1015_v4  ;;  %v1017_v16 = vmul.f32 %v1015_v4, %v971_v45 }
 0xaca   : > { %1021 = vrot.lane.b32.xlu2 %v1017_v16, %s1703_s16 }
 0xacd   : > { %v1012_v17 = vpop.permute.xlu1 %1011 }
 0xace   : > { %v1016_v18 = vmul.f32 %v1012_v17, %v1836_v6 }
 0xad0   : > { %v1018_v19 = vmul.f32 %v1016_v18, %v972_v48  ;;  %1030 = vst.msk [vmem:[#allocation5 + $0x8] sm:$0xff] %vm957_vm8, %v1016_v18 }
 0xad2   : > { %1023 = vrot.lane.b32.xlu2 %v1018_v19, %s1703_s16 }
 0xb24   : > { %v1022_v20 = vpop.permute.xlu2 %1021 }
 0xb25   : > { %v1027_v21 = vsub.f32 %v1831_v5, %v1022_v20 }
 0xb27   : > { %1032 = vst.msk [vmem:[#allocation5] sm:$0xff] %vm1031_vm0, %v1027_v21 }
 0xb2c   : > { %v1024_v22 = vpop.permute.xlu2 %1023 }
 0xb2d   : > { %v1028_v23 = vsub.f32 %v1836_v6, %v1024_v22 }
 0xb2f   : > { %1033 = vst.msk [vmem:[#allocation5 + $0x8] sm:$0xff] %vm1031_vm0, %v1028_v23 }
 0xb30 PF: > { %v1705_v24 = vmov 0.0  }
 0xb31   : > { %1034 = vst [vmem:[%s1854_s24] sm:$0xff] %v1705_v24 }
 0xb32   : > { %1035 = vst [vmem:[%s1854_s24 + $0x8] sm:$0xff] %v1705_v24 }
 0xb33   : > { %1036 = vst [vmem:[%s1854_s24 + $0x10] sm:$0xff] %v1705_v24 }
 0xb34   : > { %1037 = vst [vmem:[%s1854_s24 + $0x18] sm:$0xff] %v1705_v24 }
 0xb35 PF: > { %p1468_p8 = scmp.ne.s32.totalorder %s1657_s27, 3 }
 0xb36   : > { %s1708_s27 = smov (!%p1468_p8), 127   ;;  %s1709_s20 = smov (!%p1468_p8), 113  }
 0xb37   : > { %1041 = sbr.rel (%p1468_p8) target bundleno = 3463 (0xd87), region = 111  ;;  %s1710_s21 = smov (!%p1468_p8), 111  }
 0xb38   : > { %s1711_s22 = smov (!%p1468_p8), 15   ;;  %s1712_s23 = smov (!%p1468_p8), 17  }
 0xb39   : > { %s1713_s8 = smov (!%p1468_p8), 112   ;;  %s1714_s11 = smov (!%p1468_p8), 16  }
 0xb3a   : > { %s1715_s12 = smov (!%p1468_p8), 1  }
 0xb3c   : > { %1054 = vmatpush.bf16.msra.mxu0 %v1848_v11  ;;  %1067 = vmatpush.bf16.msra.mxu1 %v1852_v12  ;;  %v1042_v5 = vld [vmem:[%s2256_s1] sm:$0xf]  ;;  %vm1043_vm1 = vcmask 130048   ;;  %v2107_v6 = vld [vmem:[#allocation4] sm:$0xff]  ;;  %v1706_v25 = vmov 0   ;;  %v1707_v27 = vmov 1   ;;  %v1093_v39 = vlaneseq }
 0xb3d   : > { %1606 = vset.pattern.permute.xlu0 %v1706_v25  ;;  %v1163_v43 = vld [vmem:[%s2261_s6 + $0x80] sm:$0xff]  ;;  %v1164_v44 = vld [vmem:[%s2261_s6 + $0x88] sm:$0xff]  ;;  %vm1198_vm4 = vcmask 1043456   ;;  %v1161_v59 = vld [vmem:[%s2261_s6 + $0x70] sm:$0xff]  ;;  %v1716_v15 = vmov 2   ;;  %v1717_v4 = vmov 3  }
 0xb3e   : > { %1076 = vperm.xlu0 %1606, %v2107_v6   ;;  %v2134_v41 = vand.u32 127, %v1093_v39  ;;  %v1159_v53 = vld [vmem:[%s2261_s6 + $0x60] sm:$0xff]  ;;  %v1160_v56 = vld [vmem:[%s2261_s6 + $0x68] sm:$0xff]  ;;  %v1162_v60 = vld [vmem:[%s2261_s6 + $0x78] sm:$0xff]  ;;  %1608 = vset.pattern.permute.xlu1 %v1716_v15  ;;  %vm1194_vm11 = vcmask 588800   ;;  %vm1254_vm12 = vcmask 64512  }
 0xb3f   : > { %1469 = vmatmul.msk.bf16.vlgmr.msra.gmra.mxu0 %vm1043_vm1, %v1042_v5  ;;  %1470 = vmatmul.msk.bf16.vlgmr.msra.gmra.mxu1 %vm1043_vm1, %v1042_v5  ;;  %v1155_v18 = vld [vmem:[%s2261_s6 + $0x40] sm:$0xff]  ;;  %v1157_v19 = vld [vmem:[%s2261_s6 + $0x50] sm:$0xff]  ;;  %v1158_v20 = vld [vmem:[%s2261_s6 + $0x58] sm:$0xff] }
 0xb40   : > { %vm1144_vm2 = vcmp.lt.s32.totalorder %v2134_v41, 111  ;;  %vm1130_vm3 = vcmp.lt.s32.totalorder %v2134_v41, 113  ;;  %vm1137_vm5 = vcmp.lt.s32.totalorder %v2134_v41, 112  ;;  %1609 = vset.pattern.permute.xlu2 %v1717_v4  ;;  %vm1123_vm6 = vcmp.lt.s32.totalorder %v2134_v41, 127  ;;  %v1156_v21 = vld [vmem:[%s2261_s6 + $0x48] sm:$0xff] }
 0xb41   : > { %vm1109_vm7 = vcmp.lt.s32.totalorder %v2134_v41, 15  ;;  %vm1116_vm8 = vcmp.lt.s32.totalorder %v2134_v41, 1  ;;  %vm1102_vm9 = vcmp.lt.s32.totalorder %v2134_v41, 16  ;;  %vm1095_vm10 = vcmp.lt.s32.totalorder %v2134_v41, 17 }
 0xb46   : > { %1607 = vset.pattern.permute.xlu0 %v1707_v27 }
 0xb47   : > { %1082 = vperm.xlu0 %1607, %v2107_v6  }
 0xb4f   : > { %1610 = vset.pattern.permute.xlu0 %v1706_v25 }
 0xbb0   : > { %v1077_v11 = vpop.permute.xlu0 %1076 }
 0xbb9   : > { %v1083_v12 = vpop.permute.xlu0 %1082 }
 0xbbc   : > { %v1056_v28 = vpop.f32.mrf.mxu0  ;;  %v1069_v29 = vpop.f32.mrf.mxu1 }
 0xbbd   : > { %v1079_v26 = vmul.f32 %v1077_v11, %v1056_v28  ;;  %v1080_v30 = vmul.f32 %v1077_v11, %v1069_v29 }
 0xbbf   : > { %v1085_v31 = vadd.f32 %v1083_v12, %v1079_v26  ;;  %v1086_v35 = vadd.f32 %v1083_v12, %v1080_v30  ;;  %v1151_v30 = vld [vmem:[%s2261_s6 + $0x20] sm:$0xff] }
 0xbc1   : > { %v2114_v3 = vmax.f32 %v1085_v31, 0.0  ;;  %v2119_v36 = vmax.f32 %v1086_v35, 0.0  ;;  %v1154_v35 = vld [vmem:[%s2261_s6 + $0x38] sm:$0xff] }
 0xbc3   : > { %1119 = vrot.lane.b32.xlu0 %v2114_v3, %s1708_s27  ;;  %1126 = vrot.lane.b32.xlu2 %v2114_v3, %s1709_s20  ;;  %v1173_v12 = vmul.f32 %v1155_v18, %v2114_v3  ;;  %v1174_v28 = vmul.f32 %v1156_v21, %v2119_v36 }
 0xbc4   : > { %1140 = vrot.lane.b32.xlu1 %v2114_v3, %s1710_s21  ;;  %v1058_v32 = vpop.f32.mrf.mxu0  ;;  %v1071_v33 = vpop.f32.mrf.mxu1 }
 0xbc5   : > { %v1153_v33 = vld [vmem:[%s2261_s6 + $0x30] sm:$0xff] }
 0xbcb   : > { %1107 = vrot.lane.b32.xlu0 %v2119_v36, %s1711_s22  ;;  %1128 = vrot.lane.b32.xlu2 %v2119_v36, %s1709_s20 }
 0xbcc   : > { %1142 = vrot.lane.b32.xlu1 %v2119_v36, %s1710_s21 }
 0xbd3   : > { %1089 = vrot.lane.b32.xlu0 %v2114_v3, %s1712_s23  ;;  %1135 = vrot.lane.b32.xlu2 %v2119_v36, %s1713_s8 }
 0xbd4   : > { %1133 = vrot.lane.b32.xlu1 %v2114_v3, %s1713_s8 }
 0xbdb   : > { %1100 = vrot.lane.b32.xlu0 %v2119_v36, %s1714_s11  ;;  %1105 = vrot.lane.b32.xlu2 %v2114_v3, %s1711_s22 }
 0xbdc   : > { %1121 = vrot.lane.b32.xlu1 %v2119_v36, %s1708_s27 }
 0xbe3   : > { %1114 = vrot.lane.b32.xlu2 %v2119_v36, %s1715_s12 }
 0xbe4   : > { %1112 = vrot.lane.b32.xlu1 %v2114_v3, %s1715_s12 }
 0xbeb   : > { %1098 = vrot.lane.b32.xlu2 %v2114_v3, %s1714_s11  ;;  %v1152_v3 = vld [vmem:[%s2261_s6 + $0x28] sm:$0xff] }
 0xbec   : > { %1091 = vrot.lane.b32.xlu1 %v2119_v36, %s1712_s23 }
 0xbf3   : > { %1238 = vperm.xlu2 %1609, %v2107_v6  }
 0xbf4   : > { %1232 = vperm.xlu1 %1608, %v2107_v6  }
 0xbfb   : > { %1612 = vset.pattern.permute.xlu2 %v1707_v27 }
 0xbfc   : > { %1611 = vset.pattern.permute.xlu1 %v1706_v25 }
 0xc1d   : > { %v1127_v37 = vpop.permute.xlu2 %1126 }
 0xc25   : > { %v1129_v38 = vpop.permute.xlu2 %1128 }
 0xc26   : > { %v1131_v54 = vsel %vm1130_vm3, %v1127_v37, %v1129_v38  ;;  %v1132_v57 = vsel %vm1130_vm3, %v1129_v38, %v1127_v37 }
 0xc27   : > { %v1177_v58 = vmul.f32 %v1159_v53, %v1131_v54  ;;  %v1178_v1 = vmul.f32 %v1160_v56, %v1132_v57  ;;  %v1148_v53 = vld [vmem:[%s2261_s6 + $0x8] sm:$0xff] }
 0xc2d   : > { %v1136_v45 = vpop.permute.xlu2 %1135 }
 0xc35   : > { %v1120_v42 = vpop.permute.xlu0 %1119  ;;  %v1106_v2 = vpop.permute.xlu2 %1105 }
 0xc36   : > { %v1141_v40 = vpop.permute.xlu1 %1140 }
 0xc3d   : > { %v1108_v61 = vpop.permute.xlu0 %1107  ;;  %v1115_v29 = vpop.permute.xlu2 %1114 }
 0xc3e   : > { %v1143_v46 = vpop.permute.xlu1 %1142  ;;  %v1110_v25 = vsel %vm1109_vm7, %v1106_v2, %v1108_v61  ;;  %v1111_v32 = vsel %vm1109_vm7, %v1108_v61, %v1106_v2  ;;  %v1183_v61 = vld [vmem:[%s2257_s2] sm:$0xf] }
 0xc3f   : > { %v1145_v47 = vsel %vm1144_vm2, %v1141_v40, %v1143_v46  ;;  %v1146_v48 = vsel %vm1144_vm2, %v1143_v46, %v1141_v40  ;;  %v1169_v39 = vmul.f32 %v1151_v30, %v1111_v32  ;;  %v1170_v40 = vmul.f32 %v1152_v3, %v1110_v25 }
 0xc40   : > { %v1181_v49 = vmul.f32 %v1163_v43, %v1145_v47  ;;  %v1182_v50 = vmul.f32 %v1164_v44, %v1146_v48  ;;  %v1149_v48 = vld [vmem:[%s2261_s6 + $0x10] sm:$0xff] }
 0xc42   : > { %v1192_v51 = vpack.c.bf16 %v1181_v49, %v1181_v49  ;;  %v1193_v52 = vpack.c.bf16 %v1182_v50, %v1182_v50  ;;  %v1150_v49 = vld [vmem:[%s2261_s6 + $0x18] sm:$0xff] }
 0xc44   : > { %v1200_v34 = vsel %vm1198_vm4, %v1192_v51, 0  ;;  %v1203_v55 = vsel %vm1198_vm4, %v1193_v52, 0  ;;  %v1147_v52 = vld [vmem:[%s2261_s6] sm:$0xff] }
 0xc45   : > { %1208 = vmatpush.bf16.msra.mxu2 %v1200_v34  ;;  %1221 = vmatpush.bf16.msra.mxu3 %v1203_v55  ;;  %v1090_v5 = vpop.permute.xlu0 %1089  ;;  %v1099_v47 = vpop.permute.xlu2 %1098 }
 0xc46   : > { %v1134_v62 = vpop.permute.xlu1 %1133 }
 0xc47   : > { %v1138_v63 = vsel %vm1137_vm5, %v1134_v62, %v1136_v45  ;;  %v1139_v0 = vsel %vm1137_vm5, %v1136_v45, %v1134_v62  ;;  %v1293_v62 = vld [vmem:[#allocation5 + $0x8] sm:$0xff] }
 0xc48   : > { %v1179_v13 = vmul.f32 %v1161_v59, %v1138_v63  ;;  %v1180_v14 = vmul.f32 %v1162_v60, %v1139_v0  ;;  %v1292_v63 = vld [vmem:[#allocation5] sm:$0xff]  ;;  %1301 = vperm.xlu1 %1611, %v1293_v62  }
 0xc49   : > { %1296 = vperm.xlu0 %1610, %v1292_v63   ;;  %1309 = vperm.xlu2 %1612, %v1292_v63  }
 0xc4a   : > { %v1190_v16 = vpack.c.bf16 %v1179_v13, %v1177_v58  ;;  %v1191_v17 = vpack.c.bf16 %v1180_v14, %v1178_v1 }
 0xc4c   : > { %1209 = vmatpush.bf16.msra.mxu2 %v1190_v16  ;;  %1222 = vmatpush.bf16.msra.mxu3 %v1191_v17 }
 0xc4d   : > { %v1101_v44 = vpop.permute.xlu0 %1100  ;;  %v1239_v1 = vpop.permute.xlu2 %1238 }
 0xc4e   : > { %v1122_v22 = vpop.permute.xlu1 %1121  ;;  %v1103_v50 = vsel %vm1102_vm9, %v1099_v47, %v1101_v44  ;;  %v1104_v51 = vsel %vm1102_vm9, %v1101_v44, %v1099_v47 }
 0xc4f   : > { %v1124_v23 = vsel %vm1123_vm6, %v1120_v42, %v1122_v22  ;;  %v1125_v24 = vsel %vm1123_vm6, %v1122_v22, %v1120_v42  ;;  %v1167_v56 = vmul.f32 %v1149_v48, %v1104_v51  ;;  %v1168_v57 = vmul.f32 %v1150_v49, %v1103_v50 }
 0xc50   : > { %v1175_v6 = vmul.f32 %v1157_v19, %v1124_v23  ;;  %v1176_v11 = vmul.f32 %v1158_v20, %v1125_v24  ;;  %1613 = vset.pattern.permute.xlu1 %v1707_v27 }
 0xc51   : > { %1614 = vset.pattern.permute.xlu0 %v1707_v27  ;;  %1313 = vperm.xlu1 %1613, %v1293_v62   ;;  %v1486_v27 = vld [vmem:[%s2258_s3] sm:$0xff] }
 0xc52   : > { %v1188_v26 = vpack.c.bf16 %v1175_v6, %v1173_v12  ;;  %v1189_v31 = vpack.c.bf16 %v1176_v11, %v1174_v28 }
 0xc54   : > { %1210 = vmatpush.bf16.msra.mxu2 %v1188_v26  ;;  %1223 = vmatpush.bf16.msra.mxu3 %v1189_v31 }
 0xc56   : > { %v1113_v36 = vpop.permute.xlu1 %1112 }
 0xc57   : > { %v1117_v37 = vsel %vm1116_vm8, %v1113_v36, %v1115_v29  ;;  %v1118_v38 = vsel %vm1116_vm8, %v1115_v29, %v1113_v36 }
 0xc58   : > { %v1171_v42 = vmul.f32 %v1153_v33, %v1118_v38  ;;  %v1172_v43 = vmul.f32 %v1154_v35, %v1117_v37 }
 0xc5a   : > { %v1186_v45 = vpack.c.bf16 %v1171_v42, %v1169_v39  ;;  %v1187_v46 = vpack.c.bf16 %v1172_v43, %v1170_v40 }
 0xc5c   : > { %1211 = vmatpush.bf16.msra.mxu2 %v1186_v45  ;;  %1224 = vmatpush.bf16.msra.mxu3 %v1187_v46 }
 0xc5e   : > { %v1092_v54 = vpop.permute.xlu1 %1091 }
 0xc5f   : > { %v1096_v34 = vsel %vm1095_vm10, %v1090_v5, %v1092_v54  ;;  %v1097_v55 = vsel %vm1095_vm10, %v1092_v54, %v1090_v5 }
 0xc60   : > { %v1165_v41 = vmul.f32 %v1147_v52, %v1097_v55  ;;  %v1166_v59 = vmul.f32 %v1148_v53, %v1096_v34 }
 0xc62   : > { %v1184_v60 = vpack.c.bf16 %v1167_v56, %v1165_v41  ;;  %v1185_v58 = vpack.c.bf16 %v1168_v57, %v1166_v59 }
 0xc64   : > { %1212 = vmatpush.bf16.msra.mxu2 %v1184_v60  ;;  %1225 = vmatpush.bf16.msra.mxu3 %v1185_v58 }
 0xc66   : > { %v1233_v0 = vpop.permute.xlu1 %1232 }
 0xc67   : > { %1471 = vmatmul.msk.bf16.vlgmr.msra.gmra.mxu2 %vm1194_vm11, %v1183_v61  ;;  %1472 = vmatmul.msk.bf16.vlgmr.msra.gmra.mxu3 %vm1194_vm11, %v1183_v61 }
 0xca3   : > { %v1310_v11 = vpop.permute.xlu2 %1309 }
 0xcba   : > { %v1302_v5 = vpop.permute.xlu1 %1301 }
 0xcbb   : > { %v1297_v6 = vpop.permute.xlu0 %1296 }
 0xcc3   : > { %v1314_v35 = vpop.permute.xlu1 %1313 }
 0xcea   : > { %v1227_v2 = vpop.f32.mrf.mxu3  ;;  %v1214_v13 = vpop.f32.mrf.mxu2 }
 0xceb   : > { %v1236_v14 = vmul.f32 %v1233_v0, %v1227_v2  ;;  %v1235_v15 = vmul.f32 %v1233_v0, %v1214_v13 }
 0xced   : > { %v1241_v4 = vadd.f32 %v1239_v1, %v1235_v15  ;;  %v1242_v16 = vadd.f32 %v1239_v1, %v1236_v14 }
 0xcef   : > { %v1243_v17 = vmax.f32 %v1241_v4, 0.0  ;;  %v1244_v18 = vmax.f32 %v1242_v16, 0.0 }
 0xcf1   : > { %v1247_v19 = vpack.c.bf16 %v1243_v17, %v1243_v17  ;;  %v1248_v20 = vpack.c.bf16 %v1244_v18, %v1244_v18 }
 0xcf2   : > { %v1216_v21 = vpop.f32.mrf.mxu2  ;;  %v1229_v22 = vpop.f32.mrf.mxu3 }
 0xcf3   : > { %v1259_v23 = vsel %vm1198_vm4, %v1247_v19, 0  ;;  %v1262_v24 = vsel %vm1198_vm4, %v1248_v20, 0 }
 0xcf4   : > { %1271 = vmatpush.bf16.msrb.mxu0 %v1259_v23  ;;  %1285 = vmatpush.bf16.msrb.mxu1 %v1262_v24 }
 0xcf7   : > { %1477 = vmatmul.msk.bf16.vlgmr.msrb.gmra.mxu0 %vm1254_vm12, %v1486_v27  ;;  %1478 = vmatmul.msk.bf16.vlgmr.msrb.gmra.mxu1 %vm1254_vm12, %v1486_v27 }
 0xd74   : > { %v1273_v12 = vpop.f32.mrf.mxu0  ;;  %v1287_v28 = vpop.f32.mrf.mxu1 }
 0xd75   : > { %v1304_v29 = vmul.f32 %v1297_v6, %v1273_v12  ;;  %v1305_v26 = vmul.f32 %v1297_v6, %v1287_v28 }
 0xd77   : > { %v1316_v31 = vadd.f32 %v1310_v11, %v1304_v29  ;;  %v1317_v30 = vadd.f32 %v1310_v11, %v1305_v26 }
 0xd79   : > { %v1320_v3 = vadd.f32 %v1316_v31, %v1838_v7  ;;  %v1321_v25 = vadd.f32 %v1317_v30, %v1840_v8 }
 0xd7b   : > { %v1324_v32 = vmax.f32 %v1320_v3, 0.0  ;;  %v1325_v33 = vmax.f32 %v1321_v25, 0.0 }
 0xd7c   : > { %v1275_v36 = vpop.f32.mrf.mxu0  ;;  %v1289_v37 = vpop.f32.mrf.mxu1 }
 0xd7d   : > { %v1306_v38 = vmul.f32 %v1302_v5, %v1275_v36  ;;  %v1307_v39 = vmul.f32 %v1302_v5, %v1289_v37  ;;  %1328 = vst [vmem:[%s1854_s24] sm:$0xff] %v1324_v32 }
 0xd7e   : > { %1329 = vst [vmem:[%s1854_s24 + $0x8] sm:$0xff] %v1325_v33 }
 0xd7f   : > { %v1318_v40 = vadd.f32 %v1314_v35, %v1306_v38  ;;  %v1319_v42 = vadd.f32 %v1314_v35, %v1307_v39 }
 0xd81   : > { %v1322_v43 = vadd.f32 %v1318_v40, %v1842_v9  ;;  %v1323_v44 = vadd.f32 %v1319_v42, %v1844_v10 }
 0xd83   : > { %v1326_v7 = vmax.f32 %v1322_v43, 0.0  ;;  %v1327_v45 = vmax.f32 %v1323_v44, 0.0 }
 0xd85   : > { %1330 = vst [vmem:[%s1854_s24 + $0x10] sm:$0xff] %v1326_v7 }
 0xd86   : > { %1331 = vst [vmem:[%s1854_s24 + $0x18] sm:$0xff] %v1327_v45 }
 0xd87 PF: > { %1338 = sbr.rel (!%p1810_p7) target bundleno = 3471 (0xd8f), region = 115  ;;  %s1487_s16 = sshll.u32 (%p1810_p7), %s1653_s26, 4  ;;  %v1354_v8 = vld [vmem:[%s1854_s24] sm:$0xff] (%p1810_p7)  ;;  %v1356_v46 = vld [vmem:[%s1854_s24 + $0x8] sm:$0xff] (%p1810_p7) }
 0xd88   : > { %s1341_s19 = scalar_lea.vmem (%p1810_p7), %s2262_s7, %s1487_s16 }
 0xd89   : > { %1355 = vst [vmem:[%s1341_s19] sm:$0xff] (%p1810_p7), %v1354_v8 }
 0xd8a   : > { %1357 = vst [vmem:[%s1341_s19 + $0x8] sm:$0xff] (%p1810_p7), %v1356_v46 }
 0xd8c   : > { %v1358_v9 = vld [vmem:[%s1854_s24 + $0x10] sm:$0xff] }
 0xd8d   : > { %v1360_v10 = vld [vmem:[%s1854_s24 + $0x18] sm:$0xff]  ;;  %1359 = vst [vmem:[%s1341_s19 + $0x40] sm:$0xff] %v1358_v9 }
 0xd8e   : > { %1361 = vst [vmem:[%s1341_s19 + $0x48] sm:$0xff] %v1360_v10 }
 0xd8f PF: > { %s17_s30 = sadd.s32 1, %s1669_s30   ;;  %s2264_s24 = smov %s1649_s25 }
 0xd90   : > { %p14_p7 = scmp.ge.s32.totalorder %s17_s30, 18   ;;  %s2265_s25 = smov %s1808_s13 }
 0xd91   : > { %s2266_s26 = smov %s1661_s28  ;;  %s2267_s27 = smov %s1665_s29 }
 0xd92   : > { %s2268_s28 = smov %s2271_s9  ;;  %s2269_s29 = smov %s2275_s10 }
 0xd93   :  { %16 = sbr.rel (!%p14_p7) target bundleno = 4 (0x4), region = 169 }

</bundles_post_ra>
